<compile_context>
chip_gen: v6e
topology: v6e:2x2x1
jax: 0.10.0
libtpu: 0.0.40
codegen_flags: <defaults>
</compile_context>

<pallas_src>
import functools

import jax
import jax.numpy as jnp
from jax.experimental import pallas as pl
from jax.experimental.pallas import tpu as pltpu

H1 = 256          # hidden width of first Linear (fixed by the module)
H2 = 512          # hidden width of second Linear (fixed by the module)
_BN_EPS = 1e-5
_MIB = 1 << 20


def _round_up(n, m):
    return (n + m - 1) // m * m


def _round_down(n, m):
    return max(m, n // m * m)


def _chip_info():
    """Best-effort TPU-generation detection (never raises)."""
    try:
        kind = jax.devices()[0].device_kind.lower()
    except Exception:
        kind = ""
    old_gen = any(t in kind for t in ("v2", "v3", "v4", "v5"))   # 128-row MXU, no bf16 EUP
    is_v7 = ("v7" in kind) or ("7x" in kind)
    known = old_gen or is_v7 or ("v6" in kind)
    return {
        "m_align": 128 if old_gen else 256,      # MXU rows per pass
        "bf16_tanh_ok": not old_gen,             # v6e/v7x EUP has a bf16 path
        # v7x: 64 MiB physical VMEM per TC -> stay well under; v5e/v6e: 128 MiB.
        "vmem_limit": (96 * _MIB) if (known and not is_v7) else (48 * _MIB),
    }


def _fold_bn(w, b, gamma, beta, mean, var, eps=_BN_EPS):
    """Fold eval-mode BatchNorm1d into the preceding Linear (done once, in f32)."""
    scale = gamma * jax.lax.rsqrt(var + eps)                  # (out,)
    return w * scale[:, None], (b - mean) * scale + beta


def _mlp_generator_kernel(x_ref, w1_ref, b1_ref, w2_ref, b2_ref, w3_ref, b3_ref,
                          o_ref, *, act_dtype):
    # Weights pre-transposed to (K, N); BN folded; biases (1, N) f32.
    x = x_ref[...].astype(w1_ref.dtype)
    z1 = jnp.dot(x, w1_ref[...], preferred_element_type=jnp.float32) + b1_ref[...]
    h1 = jnp.tanh(z1.astype(act_dtype))                        # bf16 EUP on v6e/v7x
    z2 = jnp.dot(h1.astype(w2_ref.dtype), w2_ref[...],
                 preferred_element_type=jnp.float32) + b2_ref[...]
    h2 = jnp.tanh(z2.astype(act_dtype))
    out = jnp.dot(h2.astype(w3_ref.dtype), w3_ref[...],
                  preferred_element_type=jnp.float32) + b3_ref[...]
    o_ref[...] = out.astype(o_ref.dtype)


def prepare_generator_params(params, *, weights_dtype=jnp.bfloat16, block_n=2048):
    """One-time parameter prep (BN fold, transpose, pad, cast).

    Hoisted off the per-call path so repeated generation calls only stream x/out.
    """
    w_dt = jnp.dtype(weights_dtype)
    L = params["w1"].shape[1]
    N = params["w3"].shape[0]

    w1f, b1f = _fold_bn(params["w1"], params["b1"], params["bn1_gamma"],
                        params["bn1_beta"], params["bn1_mean"], params["bn1_var"])
    w2f, b2f = _fold_bn(params["w2"], params["b2"], params["bn2_gamma"],
                        params["bn2_beta"], params["bn2_mean"], params["bn2_var"])

    # Lane-dense output head: N padded to a multiple of the N tile (itself a
    # multiple of 128) -> full-lane unmasked stores; sliced back after the call.
    n128 = _round_up(N, 128)
    tn = min(_round_down(block_n, 128), n128)
    n_pad = _round_up(N, tn)

    w3_t = jnp.zeros((H2, n_pad), w_dt).at[:, :N].set(params["w3"].T.astype(w_dt))
    b3_p = jnp.zeros((1, n_pad), jnp.float32).at[:, :N].set(params["b3"])

    return {
        "L": L, "N": N, "n_pad": n_pad, "tn": tn, "w_itemsize": w_dt.itemsize,
        "w1_t": w1f.T.astype(w_dt),                            # (L,  H1)
        "b1": b1f.reshape(1, H1).astype(jnp.float32),
        "w2_t": w2f.T.astype(w_dt),                            # (H1, H2)
        "b2": b2f.reshape(1, H2).astype(jnp.float32),
        "w3_t": w3_t,                                          # (H2, n_pad)
        "b3": b3_p,
    }


def generator_forward(x, prep, *, block_batch=2048):
    """x: (B, noise_len) f32 -> (B, n_samples) f32 (eval-mode forward)."""
    B, L = x.shape
    assert L == prep["L"], "noise_len mismatch with prepared params"
    N, n_pad, tn, w_it = prep["N"], prep["n_pad"], prep["tn"], prep["w_itemsize"]

    chip = _chip_info()
    m_align = chip["m_align"]
    act_dtype = (jnp.bfloat16
                 if (chip["bf16_tanh_ok"]
                     and prep["w1_t"].dtype == jnp.dtype(jnp.bfloat16))
                 else jnp.float32)

    # ---------------- batch tile: as big as the VMEM budget allows ----------------
    # NOTE: constant-index_map weights are fetched once; pl.Buffered(1) could halve
    # their footprint, but we instead just budget them conservatively (x2) here.
    weight_bytes = (L * H1 + H1 * H2 + H2 * tn) * w_it + (H1 + H2 + tn) * 4
    per_row = (2 * L * 4 + 2 * tn * 4                 # double-buffered x / out tiles
               + 2 * (H1 + H2) * 4                    # f32 z/h intermediates
               + (L + H1 + H2) * w_it)                # bf16 casts feeding the MXU
    avail = chip["vmem_limit"] - 2 * weight_bytes - 2 * _MIB
    tb_vmem = max(m_align, int(avail // max(per_row, 1)))

    tb = min(block_batch, tb_vmem, _round_up(B, m_align))
    tb = _round_down(tb, m_align)
    # Keep >=2 batch grid steps whenever B allows, so the "parallel" axis can shard
    # across both v7x TensorCores (no effect on single-TC v5e/v6e).
    if B >= 2 * m_align:
        tb = min(tb, _round_up((B + 1) // 2, m_align))
    b_pad = _round_up(B, tb)

    x_p = x if b_pad == B else jnp.zeros((b_pad, L), x.dtype).at[:B].set(x)

    grid = (b_pad // tb, n_pad // tn)
    n_steps = grid[1]

    # ---------------- cost estimate ----------------
    flops = 2 * b_pad * n_steps * (L * H1 + H1 * H2) + 2 * b_pad * H2 * n_pad
    transcendentals = b_pad * n_steps * (H1 + H2)
    bytes_accessed = (b_pad * L * 4
                      + (L * H1 + H1 * H2 + H2 * n_pad) * w_it
                      + (H1 + H2 + n_pad) * 4
                      + b_pad * n_pad * 4)

    kernel = functools.partial(_mlp_generator_kernel, act_dtype=act_dtype)

    out = pl.pallas_call(
        kernel,
        out_shape=jax.ShapeDtypeStruct((b_pad, n_pad), jnp.float32),
        grid=grid,
        in_specs=[
            pl.BlockSpec((tb, L), lambda i, j: (i, 0)),    # x tile (resident across j)
            pl.BlockSpec((L, H1), lambda i, j: (0, 0)),    # weights stay VMEM-resident
            pl.BlockSpec((1, H1), lambda i, j: (0, 0)),
            pl.BlockSpec((H1, H2), lambda i, j: (0, 0)),
            pl.BlockSpec((1, H2), lambda i, j: (0, 0)),
            pl.BlockSpec((H2, tn), lambda i, j: (0, j)),   # output head tiled over N
            pl.BlockSpec((1, tn), lambda i, j: (0, j)),
        ],
        out_specs=pl.BlockSpec((tb, tn), lambda i, j: (i, j)),
        compiler_params=pltpu.CompilerParams(
            dimension_semantics=("parallel", "parallel"),  # megacore sharding on v7x
            vmem_limit_bytes=chip["vmem_limit"]),
        cost_estimate=pl.CostEstimate(flops=flops,
                                      transcendentals=transcendentals,
                                      bytes_accessed=bytes_accessed),
    )(x_p, prep["w1_t"], prep["b1"], prep["w2_t"], prep["b2"],
      prep["w3_t"], prep["b3"])

    return out[:B, :N]


def init_params(key, noise_len, n_samples):
    """Deterministic synthetic init mirroring nn.Linear / nn.BatchNorm1d shapes."""
    ks = jax.random.split(key, 18)

    def lin(kw, kb, fan_in, fan_out):
        s = 1.0 / jnp.sqrt(fan_in)
        return (jax.random.uniform(kw, (fan_out, fan_in), jnp.float32, -s, s),
                jax.random.uniform(kb, (fan_out,), jnp.float32, -s, s))

    w1, b1 = lin(ks[0], ks[1], noise_len, H1)
    w2, b2 = lin(ks[2], ks[3], H1, H2)
    w3, b3 = lin(ks[4], ks[5], H2, n_samples)
    return {
        "w1": w1, "b1": b1,
        "bn1_gamma": jax.random.uniform(ks[6], (H1,), jnp.float32, 0.5, 1.5),
        "bn1_beta": 0.1 * jax.random.normal(ks[7], (H1,), jnp.float32),
        "bn1_mean": 0.1 * jax.random.normal(ks[8], (H1,), jnp.float32),
        "bn1_var": jax.random.uniform(ks[9], (H1,), jnp.float32, 0.5, 1.5),
        "w2": w2, "b2": b2,
        "bn2_gamma": jax.random.uniform(ks[10], (H2,), jnp.float32, 0.5, 1.5),
        "bn2_beta": 0.1 * jax.random.normal(ks[11], (H2,), jnp.float32),
        "bn2_mean": 0.1 * jax.random.normal(ks[12], (H2,), jnp.float32),
        "bn2_var": jax.random.uniform(ks[13], (H2,), jnp.float32, 0.5, 1.5),
        "w3": w3, "b3": b3,
    }


def reference_forward(x, p, eps=_BN_EPS):
    """Pure-JAX reference of the PyTorch eval-mode forward (unfolded BN)."""
    h = x @ p["w1"].T + p["b1"]
    h = (h - p["bn1_mean"]) * jax.lax.rsqrt(p["bn1_var"] + eps) * p["bn1_gamma"] + p["bn1_beta"]
    h = jnp.tanh(h)
    h = h @ p["w2"].T + p["b2"]
    h = (h - p["bn2_mean"]) * jax.lax.rsqrt(p["bn2_var"] + eps) * p["bn2_gamma"] + p["bn2_beta"]
    h = jnp.tanh(h)
    return h @ p["w3"].T + p["b3"]


if __name__ == "__main__":
    B = 64
    noise_len = 32
    n_samples = 24   # not a multiple of 128 -> exercises the lane-dense padding path

    key = jax.random.PRNGKey(0)
    kx, kp = jax.random.split(key)
    x = jax.random.normal(kx, (B, noise_len), dtype=jnp.float32)
    params = init_params(kp, noise_len, n_samples)

    ref = reference_forward(x, params)

    # f32-weight path: exact numerics, strict check.
    prep_f32 = prepare_generator_params(params, weights_dtype=jnp.float32)
    out_f32 = jax.block_until_ready(generator_forward(x, prep_f32))
    assert out_f32.shape == (B, n_samples)
    assert jnp.allclose(out_f32, ref, atol=1e-3, rtol=1e-3), "f32 path mismatch vs reference"

    # Default path: bf16 weights (+ bf16 tanh on v6e/v7x), f32 accumulation.
    prep_bf16 = prepare_generator_params(params)
    out_bf16 = jax.block_until_ready(generator_forward(x, prep_bf16))
    assert out_bf16.shape == (B, n_samples)
    assert jnp.allclose(out_bf16, ref, atol=1e-1, rtol=1e-1), "bf16 path mismatch vs reference"

    print("KERNEL_OK")
</pallas_src>

<mosaic_0001>
module attributes {stable_mosaic.version = 11 : i64} {
  func.func @_mlp_generator_kernel(%arg0: i32, %arg1: i32, %arg2: memref<256x32xf32, #tpu.memory_space<vmem>>, %arg3: memref<32x256xf32, #tpu.memory_space<vmem>>, %arg4: memref<1x256xf32, #tpu.memory_space<vmem>>, %arg5: memref<256x512xf32, #tpu.memory_space<vmem>>, %arg6: memref<1x512xf32, #tpu.memory_space<vmem>>, %arg7: memref<512x128xf32, #tpu.memory_space<vmem>>, %arg8: memref<1x128xf32, #tpu.memory_space<vmem>>, %arg9: memref<256x128xf32, #tpu.memory_space<vmem>>) attributes {dimension_semantics = [#tpu.dimension_semantics<parallel>, #tpu.dimension_semantics<parallel>], iteration_bounds = array<i64: 1, 1>, scalar_prefetch = 0 : i64, scratch_operands = 0 : i64, tpu.core_type = #tpu.core_type<tc>, window_params = [{transform_indices = @transform_0, window_bounds = array<i64: 256, 32>}, {pipeline_mode = #tpu.pipeline_mode<synchronous>, transform_indices = @transform_1, window_bounds = array<i64: 32, 256>}, {pipeline_mode = #tpu.pipeline_mode<synchronous>, transform_indices = @transform_2, window_bounds = array<i64: 1, 256>}, {pipeline_mode = #tpu.pipeline_mode<synchronous>, transform_indices = @transform_3, window_bounds = array<i64: 256, 512>}, {pipeline_mode = #tpu.pipeline_mode<synchronous>, transform_indices = @transform_4, window_bounds = array<i64: 1, 512>}, {transform_indices = @transform_5, window_bounds = array<i64: 512, 128>}, {transform_indices = @transform_6, window_bounds = array<i64: 1, 128>}, {transform_indices = @transform_7, window_bounds = array<i64: 256, 128>}]} {
    %c0 = arith.constant 0 : index
    %c0_0 = arith.constant 0 : index
    %0 = vector.load %arg2[%c0, %c0_0] : memref<256x32xf32, #tpu.memory_space<vmem>>, vector<256x32xf32>
    %c0_1 = arith.constant 0 : index
    %c0_2 = arith.constant 0 : index
    %1 = vector.load %arg3[%c0_1, %c0_2] : memref<32x256xf32, #tpu.memory_space<vmem>>, vector<32x256xf32>
    %cst = arith.constant dense<0.000000e+00> : vector<256x256xf32>
    %2 = tpu.matmul %0, %1, %cst {dimension_numbers = #tpu.dot_dimension_numbers<[1], [0], [0], [1], [0, 0, 1, 1], [], []>} : vector<256x32xf32>, vector<32x256xf32>, vector<256x256xf32> -> vector<256x256xf32>
    %c0_3 = arith.constant 0 : index
    %c0_4 = arith.constant 0 : index
    %3 = vector.load %arg4[%c0_3, %c0_4] : memref<1x256xf32, #tpu.memory_space<vmem>>, vector<1x256xf32>
    %4 = vector.broadcast %3 : vector<1x256xf32> to vector<256x256xf32>
    %5 = arith.addf %2, %4 : vector<256x256xf32>
    %6 = math.tanh %5 : vector<256x256xf32>
    %c0_5 = arith.constant 0 : index
    %c0_6 = arith.constant 0 : index
    %7 = vector.load %arg5[%c0_5, %c0_6] : memref<256x512xf32, #tpu.memory_space<vmem>>, vector<256x512xf32>
    %cst_7 = arith.constant dense<0.000000e+00> : vector<256x512xf32>
    %8 = tpu.matmul %6, %7, %cst_7 {dimension_numbers = #tpu.dot_dimension_numbers<[1], [0], [0], [1], [0, 0, 1, 1], [], []>} : vector<256x256xf32>, vector<256x512xf32>, vector<256x512xf32> -> vector<256x512xf32>
    %c0_8 = arith.constant 0 : index
    %c0_9 = arith.constant 0 : index
    %9 = vector.load %arg6[%c0_8, %c0_9] : memref<1x512xf32, #tpu.memory_space<vmem>>, vector<1x512xf32>
    %10 = vector.broadcast %9 : vector<1x512xf32> to vector<256x512xf32>
    %11 = arith.addf %8, %10 : vector<256x512xf32>
    %12 = math.tanh %11 : vector<256x512xf32>
    %c0_10 = arith.constant 0 : index
    %c0_11 = arith.constant 0 : index
    %13 = vector.load %arg7[%c0_10, %c0_11] : memref<512x128xf32, #tpu.memory_space<vmem>>, vector<512x128xf32>
    %cst_12 = arith.constant dense<0.000000e+00> : vector<256x128xf32>
    %14 = tpu.matmul %12, %13, %cst_12 {dimension_numbers = #tpu.dot_dimension_numbers<[1], [0], [0], [1], [0, 0, 1, 1], [], []>} : vector<256x512xf32>, vector<512x128xf32>, vector<256x128xf32> -> vector<256x128xf32>
    %c0_13 = arith.constant 0 : index
    %c0_14 = arith.constant 0 : index
    %15 = vector.load %arg8[%c0_13, %c0_14] : memref<1x128xf32, #tpu.memory_space<vmem>>, vector<1x128xf32>
    %16 = vector.broadcast %15 : vector<1x128xf32> to vector<256x128xf32>
    %17 = arith.addf %14, %16 : vector<256x128xf32>
    %c0_15 = arith.constant 0 : index
    %c0_16 = arith.constant 0 : index
    %18 = vector.load %arg9[%c0_15, %c0_16] : memref<256x128xf32, #tpu.memory_space<vmem>>, vector<256x128xf32>
    tpu.vector_store %arg9[%c0_15, %c0_16], %17 {strides = array<i32>} : memref<256x128xf32, #tpu.memory_space<vmem>>, vector<256x128xf32>,
    return
  }
  func.func @transform_0(%arg0: i32, %arg1: i32) -> (i32, i32) {
    %c0_i32 = arith.constant 0 : i32
    %c0_i32_0 = arith.constant 0 : i32
    return %arg0, %c0_i32 : i32, i32
  }
  func.func @transform_1(%arg0: i32, %arg1: i32) -> (i32, i32) {
    %c0_i32 = arith.constant 0 : i32
    %c0_i32_0 = arith.constant 0 : i32
    %c0_i32_1 = arith.constant 0 : i32
    return %c0_i32, %c0_i32_0 : i32, i32
  }
  func.func @transform_2(%arg0: i32, %arg1: i32) -> (i32, i32) {
    %c0_i32 = arith.constant 0 : i32
    %c0_i32_0 = arith.constant 0 : i32
    %c0_i32_1 = arith.constant 0 : i32
    return %c0_i32, %c0_i32_0 : i32, i32
  }
  func.func @transform_3(%arg0: i32, %arg1: i32) -> (i32, i32) {
    %c0_i32 = arith.constant 0 : i32
    %c0_i32_0 = arith.constant 0 : i32
    %c0_i32_1 = arith.constant 0 : i32
    return %c0_i32, %c0_i32_0 : i32, i32
  }
  func.func @transform_4(%arg0: i32, %arg1: i32) -> (i32, i32) {
    %c0_i32 = arith.constant 0 : i32
    %c0_i32_0 = arith.constant 0 : i32
    %c0_i32_1 = arith.constant 0 : i32
    return %c0_i32, %c0_i32_0 : i32, i32
  }
  func.func @transform_5(%arg0: i32, %arg1: i32) -> (i32, i32) {
    %c0_i32 = arith.constant 0 : i32
    %c0_i32_0 = arith.constant 0 : i32
    return %c0_i32, %arg1 : i32, i32
  }
  func.func @transform_6(%arg0: i32, %arg1: i32) -> (i32, i32) {
    %c0_i32 = arith.constant 0 : i32
    %c0_i32_0 = arith.constant 0 : i32
    return %c0_i32, %arg1 : i32, i32
  }
  func.func @transform_7(%arg0: i32, %arg1: i32) -> (i32, i32) {
    %c0_i32 = arith.constant 0 : i32
    return %arg0, %arg1 : i32, i32
  }
}

</mosaic_0001>

<bundles_post_ra>
// kernel: tpu_custom_call.1
= control target key start
LH: loop header
LB: loop body
LE: loop exit
PB: predicated region body
PF: predicated region fallthrough
CT: control target
= control target key end

     0   :  { %12 = vsyncpa [#allocation3], 0  ;;  %s3043_s0 = inlined_call_operand.vmem [shape: f32[256,32], index: 0, kind: input, shape index: {}]   ;;  %s3044_s1 = inlined_call_operand.vmem [shape: f32[32,256], index: 1, kind: input, shape index: {}]   ;;  %s3045_s2 = inlined_call_operand.vmem [shape: f32[1,256], index: 2, kind: input, shape index: {}]   ;;  %s3046_s3 = inlined_call_operand.hbm [shape: f32[256,512], index: 3, kind: input, shape index: {}]   ;;  %s3047_s4 = inlined_call_operand.vmem [shape: f32[1,512], index: 4, kind: input, shape index: {}]   ;;  %s3048_s5 = inlined_call_operand.hbm [shape: f32[512,128], index: 5, kind: input, shape index: {}]   ;;  %s3049_s6 = inlined_call_operand.vmem [shape: f32[1,128], index: 6, kind: input, shape index: {}]   ;;  %s3050_s7 = inlined_call_operand.hbm [shape: f32[256,128], index: 7, kind: output, shape index: {}]  }
   0x1   :  { %13 = vsyncpa [#allocation6], 0 }
   0x2   :  { %14 = vsyncpa [#allocation4], 0  ;;  %s2387_s24 = smov [#allocation2]  }
   0x3   :  { %s26_s25 = sshll.u32 %s2387_s24, 4  ;;  %s27_s25 = int_to_ptr.vmem [resolvable:$true] %s26_s25 }
   0x4   :  { %s2329_s26 = scalar_lea.vmem %s27_s25, 16384  ;;  %p2334_p1 = scmp.lt.s32.totalorder %s27_s25, %s27_s25 }
   0x5   :  { %p2330_p0 = scmp.ne.s32.totalorder %s27_s25, %s2329_s26  ;;  %p2335_p2 = scmp.lt.s32.totalorder %s2329_s26, %s2329_s26 }
   0x7   :  { %p2336_p3 = por %p2335_p2, %p2334_p1 }
   0x9   :  { %p2337_p4 = pnand %p2336_p3, %p2330_p0 }
   0xb   :  { %2340 = shalt.err (!%p2337_p4)
}
   0xc   :  { %s2388_s27 = smov 512   ;;  %s2389_s28 = smov 32  }
   0xd   :  { %32 = dma.hbm_to_vmem [thread:$0]  %s3046_s3, 16384, %s27_s25, [#allocation3], %s2388_s27, %s2388_s27, %s2389_s28  }
   0xe   :  { %s2390_s8 = smov [#allocation5]  }
   0xf   :  { %s40_s9 = sshll.u32 %s2390_s8, 4  ;;  %s41_s9 = int_to_ptr.vmem [resolvable:$true] %s40_s9 }
  0x10   :  { %s2349_s10 = scalar_lea.vmem %s41_s9, 8192  ;;  %p2354_p6 = scmp.lt.s32.totalorder %s41_s9, %s41_s9 }
  0x11   :  { %p2350_p5 = scmp.ne.s32.totalorder %s41_s9, %s2349_s10  ;;  %p2355_p7 = scmp.lt.s32.totalorder %s2349_s10, %s2349_s10 }
  0x13   :  { %p2356_p8 = por %p2355_p7, %p2354_p6 }
  0x15   :  { %p2357_p9 = pnand %p2356_p8, %p2350_p5 }
  0x17   :  { %2360 = shalt.err (!%p2357_p9)
}
  0x18   :  { %s2391_s11 = smov 128   ;;  %s2392_s12 = smov 8  }
  0x19   :  { %46 = dma.hbm_to_vmem [thread:$0]  %s3048_s5, 8192, %s41_s9, [#allocation6], %s2391_s11, %s2391_s11, %s2392_s12  }
  0x1a   :  { %2381 = dma.done.wait [#allocation3], 16384  }
  0x1b   :  { %2382 = vsyncadd [#allocation3], 4294950912 }
  0x1c   :  { %2383 = dma.done.wait [#allocation6], 8192  }
  0x1d   :  { %2384 = vsyncadd [#allocation6], 4294959104  ;;  %v2393_v0 = vmov 0.0   ;;  %v94_v1 = vld [vmem:[%s3044_s1 + $0x38] sm:$0xff]  ;;  %v93_v2 = vld [vmem:[%s3044_s1 + $0x30] sm:$0xff]  ;;  %vm107_vm0 = vcmask 261120  }
  0x1e   :  { %268 = vmatprep.mubr.f32.mxu0 %v2393_v0  ;;  %364 = vmatprep.mubr.f32.mxu1 %v2393_v0  ;;  %v92_v3 = vld [vmem:[%s3044_s1 + $0x28] sm:$0xff]  ;;  %v91_v4 = vld [vmem:[%s3044_s1 + $0x20] sm:$0xff]  ;;  %v90_v5 = vld [vmem:[%s3044_s1 + $0x18] sm:$0xff] }
  0x1f   :  { %228 = vmatprep.subr.mxu0 %v94_v1  ;;  %1921 = vmatprep.subr.mxu1 %v94_v1  ;;  %v89_v6 = vld [vmem:[%s3044_s1 + $0x10] sm:$0xff]  ;;  %v88_v7 = vld [vmem:[%s3044_s1 + $0x8] sm:$0xff]  ;;  %v87_v8 = vld [vmem:[%s3044_s1] sm:$0xff] }
  0x20   :  { %229 = vmatpush1.msra.mxu0 %v93_v2  ;;  %1925 = vmatpush1.msra.mxu1 %v93_v2  ;;  %v55_v9 = vld [vmem:[%s3043_s0] sm:$0xff]  ;;  %v56_v11 = vld [vmem:[%s3043_s0 + $0x8] sm:$0xff]  ;;  %v57_v13 = vld [vmem:[%s3043_s0 + $0x10] sm:$0xff] }
  0x21   :  { %230 = vmatprep.subr.mxu0 %v92_v3  ;;  %1922 = vmatprep.subr.mxu1 %v92_v3  ;;  %v71_v10 = vld [vmem:[%s3043_s0 + $0x80] sm:$0xff]  ;;  %v72_v12 = vld [vmem:[%s3043_s0 + $0x88] sm:$0xff]  ;;  %v73_v16 = vld [vmem:[%s3043_s0 + $0x90] sm:$0xff] }
  0x22   :  { %231 = vmatpush1.msra.mxu0 %v91_v4  ;;  %1926 = vmatpush1.msra.mxu1 %v91_v4  ;;  %v586_v14 = vld [vmem:[#allocation2 + $0x1e8] sm:$0xff]  ;;  %v585_v15 = vld [vmem:[#allocation2 + $0x1e0] sm:$0xff]  ;;  %v588_v17 = vld [vmem:[#allocation2 + $0x1f8] sm:$0xff] }
  0x23   :  { %232 = vmatprep.subr.mxu0 %v90_v5  ;;  %1923 = vmatprep.subr.mxu1 %v90_v5  ;;  %v587_v18 = vld [vmem:[#allocation2 + $0x1f0] sm:$0xff]  ;;  %v582_v19 = vld [vmem:[#allocation2 + $0x1c8] sm:$0xff]  ;;  %v584_v20 = vld [vmem:[#allocation2 + $0x1d8] sm:$0xff] }
  0x24   :  { %233 = vmatpush1.msra.mxu0 %v89_v6  ;;  %1927 = vmatpush1.msra.mxu1 %v89_v6  ;;  %v581_v21 = vld [vmem:[#allocation2 + $0x1c0] sm:$0xff]  ;;  %v583_v22 = vld [vmem:[#allocation2 + $0x1d0] sm:$0xff]  ;;  %v58_v23 = vld [vmem:[%s3043_s0 + $0x18] sm:$0xff] }
  0x25   :  { %234 = vmatprep.subr.mxu0 %v88_v7  ;;  %1924 = vmatprep.subr.mxu1 %v88_v7  ;;  %v74_v24 = vld [vmem:[%s3043_s0 + $0x98] sm:$0xff]  ;;  %v578_v25 = vld [vmem:[#allocation2 + $0x1a8] sm:$0xff]  ;;  %v577_v27 = vld [vmem:[#allocation2 + $0x1a0] sm:$0xff] }
  0x26   :  { %235 = vmatpush1.msra.mxu0 %v87_v8  ;;  %1928 = vmatpush1.msra.mxu1 %v87_v8  ;;  %v580_v26 = vld [vmem:[#allocation2 + $0x1b8] sm:$0xff]  ;;  %v579_v28 = vld [vmem:[#allocation2 + $0x1b0] sm:$0xff]  ;;  %v59_v29 = vld [vmem:[%s3043_s0 + $0x20] sm:$0xff] }
  0x27   :  { %1888 = vmatmul.mubr.msk.f32.vlgmr.msra.gmra.mxu0 %vm107_vm0, %v55_v9  ;;  %1904 = vmatmul.mubr.msk.f32.vlgmr.msra.gmra.mxu1 %vm107_vm0, %v71_v10  ;;  %v75_v30 = vld [vmem:[%s3043_s0 + $0xa0] sm:$0xff]  ;;  %v574_v31 = vld [vmem:[#allocation2 + $0x188] sm:$0xff]  ;;  %v576_v32 = vld [vmem:[#allocation2 + $0x198] sm:$0xff] }
  0x28   :  { %274 = vmatprep.mubr.f32.mxu0 %v2393_v0  ;;  %370 = vmatprep.mubr.f32.mxu1 %v2393_v0  ;;  %v573_v33 = vld [vmem:[#allocation2 + $0x180] sm:$0xff]  ;;  %v575_v34 = vld [vmem:[#allocation2 + $0x190] sm:$0xff]  ;;  %v60_v35 = vld [vmem:[%s3043_s0 + $0x28] sm:$0xff] }
  0x29   :  { %675 = vmatprep.subr.mxu1 %v586_v14  ;;  %932 = vmatprep.subr.mxu0 %v588_v17  ;;  %v76_v36 = vld [vmem:[%s3043_s0 + $0xa8] sm:$0xff]  ;;  %v572_v38 = vld [vmem:[#allocation2 + $0x178] sm:$0xff]  ;;  %v569_v39 = vld [vmem:[#allocation2 + $0x160] sm:$0xff] }
  0x2a   :  { %676 = vmatpush1.msra.mxu1 %v585_v15  ;;  %933 = vmatpush1.msra.mxu0 %v587_v18  ;;  %v570_v37 = vld [vmem:[#allocation2 + $0x168] sm:$0xff]  ;;  %v571_v40 = vld [vmem:[#allocation2 + $0x170] sm:$0xff]  ;;  %v568_v44 = vld [vmem:[#allocation2 + $0x158] sm:$0xff] }
  0x2b   :  { %1889 = vmatmul.mubr.msk.f32.gmra.mxu0 %vm107_vm0, %v56_v11  ;;  %1905 = vmatmul.mubr.msk.f32.gmra.mxu1 %vm107_vm0, %v72_v12  ;;  %v61_v41 = vld [vmem:[%s3043_s0 + $0x30] sm:$0xff]  ;;  %v566_v43 = vld [vmem:[#allocation2 + $0x148] sm:$0xff]  ;;  %v565_v45 = vld [vmem:[#allocation2 + $0x140] sm:$0xff] }
  0x2c   :  { %280 = vmatprep.mubr.f32.mxu0 %v2393_v0  ;;  %376 = vmatprep.mubr.f32.mxu1 %v2393_v0  ;;  %v77_v42 = vld [vmem:[%s3043_s0 + $0xb0] sm:$0xff]  ;;  %v62_v47 = vld [vmem:[%s3043_s0 + $0x38] sm:$0xff]  ;;  %v562_v49 = vld [vmem:[#allocation2 + $0x128] sm:$0xff] }
  0x2d   :  { %677 = vmatprep.subr.mxu1 %v582_v19  ;;  %934 = vmatprep.subr.mxu0 %v584_v20  ;;  %v567_v46 = vld [vmem:[#allocation2 + $0x150] sm:$0xff]  ;;  %v78_v48 = vld [vmem:[%s3043_s0 + $0xb8] sm:$0xff]  ;;  %v561_v51 = vld [vmem:[#allocation2 + $0x120] sm:$0xff] }
  0x2e   :  { %678 = vmatpush1.msra.mxu1 %v581_v21  ;;  %935 = vmatpush1.msra.mxu0 %v583_v22  ;;  %v564_v50 = vld [vmem:[#allocation2 + $0x138] sm:$0xff]  ;;  %v563_v52 = vld [vmem:[#allocation2 + $0x130] sm:$0xff]  ;;  %v63_v53 = vld [vmem:[%s3043_s0 + $0x40] sm:$0xff] }
  0x2f   :  { %1890 = vmatmul.mubr.msk.f32.gmra.mxu0 %vm107_vm0, %v57_v13  ;;  %1906 = vmatmul.mubr.msk.f32.gmra.mxu1 %vm107_vm0, %v73_v16  ;;  %v79_v54 = vld [vmem:[%s3043_s0 + $0xc0] sm:$0xff]  ;;  %v558_v55 = vld [vmem:[#allocation2 + $0x108] sm:$0xff]  ;;  %v560_v56 = vld [vmem:[#allocation2 + $0x118] sm:$0xff] }
  0x30   :  { %286 = vmatprep.mubr.f32.mxu0 %v2393_v0  ;;  %382 = vmatprep.mubr.f32.mxu1 %v2393_v0  ;;  %v557_v57 = vld [vmem:[#allocation2 + $0x100] sm:$0xff]  ;;  %v559_v58 = vld [vmem:[#allocation2 + $0x110] sm:$0xff]  ;;  %v64_v59 = vld [vmem:[%s3043_s0 + $0x48] sm:$0xff] }
  0x31   :  { %679 = vmatprep.subr.mxu1 %v578_v25  ;;  %936 = vmatprep.subr.mxu0 %v580_v26  ;;  %v80_v60 = vld [vmem:[%s3043_s0 + $0xc8] sm:$0xff]  ;;  %v556_v62 = vld [vmem:[#allocation2 + $0xf8] sm:$0xff]  ;;  %v553_v63 = vld [vmem:[#allocation2 + $0xe0] sm:$0xff] }
  0x32   :  { %680 = vmatpush1.msra.mxu1 %v577_v27  ;;  %937 = vmatpush1.msra.mxu0 %v579_v28  ;;  %v554_v61 = vld [vmem:[#allocation2 + $0xe8] sm:$0xff]  ;;  %v555_v1 = vld [vmem:[#allocation2 + $0xf0] sm:$0xff]  ;;  %v552_v5 = vld [vmem:[#allocation2 + $0xd8] sm:$0xff] }
  0x33   :  { %1891 = vmatmul.mubr.msk.f32.gmra.mxu0 %vm107_vm0, %v58_v23  ;;  %1907 = vmatmul.mubr.msk.f32.gmra.mxu1 %vm107_vm0, %v74_v24  ;;  %v65_v2 = vld [vmem:[%s3043_s0 + $0x50] sm:$0xff]  ;;  %v550_v4 = vld [vmem:[#allocation2 + $0xc8] sm:$0xff]  ;;  %v549_v6 = vld [vmem:[#allocation2 + $0xc0] sm:$0xff] }
  0x34   :  { %292 = vmatprep.mubr.f32.mxu0 %v2393_v0  ;;  %388 = vmatprep.mubr.f32.mxu1 %v2393_v0  ;;  %v81_v3 = vld [vmem:[%s3043_s0 + $0xd0] sm:$0xff]  ;;  %v66_v8 = vld [vmem:[%s3043_s0 + $0x58] sm:$0xff]  ;;  %v546_v10 = vld [vmem:[#allocation2 + $0xa8] sm:$0xff] }
  0x35   :  { %681 = vmatprep.subr.mxu1 %v574_v31  ;;  %938 = vmatprep.subr.mxu0 %v576_v32  ;;  %v551_v7 = vld [vmem:[#allocation2 + $0xd0] sm:$0xff]  ;;  %v82_v9 = vld [vmem:[%s3043_s0 + $0xd8] sm:$0xff]  ;;  %v545_v12 = vld [vmem:[#allocation2 + $0xa0] sm:$0xff] }
  0x36   :  { %682 = vmatpush1.msra.mxu1 %v573_v33  ;;  %939 = vmatpush1.msra.mxu0 %v575_v34  ;;  %v548_v11 = vld [vmem:[#allocation2 + $0xb8] sm:$0xff]  ;;  %v547_v13 = vld [vmem:[#allocation2 + $0xb0] sm:$0xff]  ;;  %v67_v14 = vld [vmem:[%s3043_s0 + $0x60] sm:$0xff] }
  0x37   :  { %1892 = vmatmul.mubr.msk.f32.gmra.mxu0 %vm107_vm0, %v59_v29  ;;  %1908 = vmatmul.mubr.msk.f32.gmra.mxu1 %vm107_vm0, %v75_v30  ;;  %v83_v15 = vld [vmem:[%s3043_s0 + $0xe0] sm:$0xff]  ;;  %v542_v16 = vld [vmem:[#allocation2 + $0x88] sm:$0xff]  ;;  %v544_v17 = vld [vmem:[#allocation2 + $0x98] sm:$0xff] }
  0x38   :  { %298 = vmatprep.mubr.f32.mxu0 %v2393_v0  ;;  %394 = vmatprep.mubr.f32.mxu1 %v2393_v0  ;;  %v541_v18 = vld [vmem:[#allocation2 + $0x80] sm:$0xff]  ;;  %v543_v19 = vld [vmem:[#allocation2 + $0x90] sm:$0xff]  ;;  %v68_v20 = vld [vmem:[%s3043_s0 + $0x68] sm:$0xff] }
  0x39   :  { %683 = vmatprep.subr.mxu1 %v570_v37  ;;  %940 = vmatprep.subr.mxu0 %v572_v38  ;;  %v84_v21 = vld [vmem:[%s3043_s0 + $0xe8] sm:$0xff]  ;;  %v540_v23 = vld [vmem:[#allocation2 + $0x78] sm:$0xff]  ;;  %v537_v24 = vld [vmem:[#allocation2 + $0x60] sm:$0xff] }
  0x3a   :  { %684 = vmatpush1.msra.mxu1 %v569_v39  ;;  %941 = vmatpush1.msra.mxu0 %v571_v40  ;;  %v538_v22 = vld [vmem:[#allocation2 + $0x68] sm:$0xff]  ;;  %v539_v25 = vld [vmem:[#allocation2 + $0x70] sm:$0xff]  ;;  %v536_v29 = vld [vmem:[#allocation2 + $0x58] sm:$0xff] }
  0x3b   :  { %1893 = vmatmul.mubr.msk.f32.gmra.mxu0 %vm107_vm0, %v60_v35  ;;  %1909 = vmatmul.mubr.msk.f32.gmra.mxu1 %vm107_vm0, %v76_v36  ;;  %v69_v26 = vld [vmem:[%s3043_s0 + $0x70] sm:$0xff]  ;;  %v534_v28 = vld [vmem:[#allocation2 + $0x48] sm:$0xff]  ;;  %v533_v30 = vld [vmem:[#allocation2 + $0x40] sm:$0xff] }
  0x3c   :  { %304 = vmatprep.mubr.f32.mxu0 %v2393_v0  ;;  %400 = vmatprep.mubr.f32.mxu1 %v2393_v0  ;;  %v85_v27 = vld [vmem:[%s3043_s0 + $0xf0] sm:$0xff]  ;;  %v70_v32 = vld [vmem:[%s3043_s0 + $0x78] sm:$0xff]  ;;  %v530_v34 = vld [vmem:[#allocation2 + $0x28] sm:$0xff] }
  0x3d   :  { %685 = vmatprep.subr.mxu1 %v566_v43  ;;  %942 = vmatprep.subr.mxu0 %v568_v44  ;;  %v535_v31 = vld [vmem:[#allocation2 + $0x50] sm:$0xff]  ;;  %v86_v33 = vld [vmem:[%s3043_s0 + $0xf8] sm:$0xff]  ;;  %v529_v36 = vld [vmem:[#allocation2 + $0x20] sm:$0xff] }
  0x3e   :  { %686 = vmatpush1.msra.mxu1 %v565_v45  ;;  %943 = vmatpush1.msra.mxu0 %v567_v46  ;;  %v532_v35 = vld [vmem:[#allocation2 + $0x38] sm:$0xff]  ;;  %v531_v37 = vld [vmem:[#allocation2 + $0x30] sm:$0xff]  ;;  %v526_v38 = vld [vmem:[#allocation2 + $0x8] sm:$0xff] }
  0x3f   :  { %1894 = vmatmul.mubr.msk.f32.gmra.mxu0 %vm107_vm0, %v61_v41  ;;  %1910 = vmatmul.mubr.msk.f32.gmra.mxu1 %vm107_vm0, %v77_v42  ;;  %v528_v39 = vld [vmem:[#allocation2 + $0x18] sm:$0xff]  ;;  %v525_v40 = vld [vmem:[#allocation2] sm:$0xff]  ;;  %v527_v41 = vld [vmem:[#allocation2 + $0x10] sm:$0xff] }
  0x40   :  { %310 = vmatprep.mubr.f32.mxu0 %v2393_v0  ;;  %406 = vmatprep.mubr.f32.mxu1 %v2393_v0  ;;  %v650_v42 = vld [vmem:[#allocation2 + $0x3e8] sm:$0xff]  ;;  %v652_v43 = vld [vmem:[#allocation2 + $0x3f8] sm:$0xff]  ;;  %v649_v44 = vld [vmem:[#allocation2 + $0x3e0] sm:$0xff] }
  0x41   :  { %687 = vmatprep.subr.mxu1 %v562_v49  ;;  %944 = vmatprep.subr.mxu0 %v564_v50  ;;  %v651_v45 = vld [vmem:[#allocation2 + $0x3f0] sm:$0xff]  ;;  %v646_v46 = vld [vmem:[#allocation2 + $0x3c8] sm:$0xff] }
  0x42   :  { %688 = vmatpush1.msra.mxu1 %v561_v51  ;;  %945 = vmatpush1.msra.mxu0 %v563_v52  ;;  %v647_v49 = vld [vmem:[#allocation2 + $0x3d0] sm:$0xff]  ;;  %v642_v50 = vld [vmem:[#allocation2 + $0x3a8] sm:$0xff]  ;;  %v644_v51 = vld [vmem:[#allocation2 + $0x3b8] sm:$0xff] }
  0x43   :  { %1895 = vmatmul.mubr.msk.f32.gmra.mxu0 %vm107_vm0, %v62_v47  ;;  %1911 = vmatmul.mubr.msk.f32.gmra.mxu1 %vm107_vm0, %v78_v48  ;;  %v648_v47 = vld [vmem:[#allocation2 + $0x3d8] sm:$0xff]  ;;  %v645_v48 = vld [vmem:[#allocation2 + $0x3c0] sm:$0xff] }
  0x44   :  { %316 = vmatprep.mubr.f32.mxu0 %v2393_v0  ;;  %412 = vmatprep.mubr.f32.mxu1 %v2393_v0  ;;  %v641_v52 = vld [vmem:[#allocation2 + $0x3a0] sm:$0xff] }
  0x45   :  { %689 = vmatprep.subr.mxu1 %v558_v55  ;;  %946 = vmatprep.subr.mxu0 %v560_v56  ;;  %v640_v55 = vld [vmem:[#allocation2 + $0x398] sm:$0xff]  ;;  %v637_v56 = vld [vmem:[#allocation2 + $0x380] sm:$0xff] }
  0x46   :  { %690 = vmatpush1.msra.mxu1 %v557_v57  ;;  %947 = vmatpush1.msra.mxu0 %v559_v58  ;;  %v639_v57 = vld [vmem:[#allocation2 + $0x390] sm:$0xff]  ;;  %v634_v58 = vld [vmem:[#allocation2 + $0x368] sm:$0xff] }
  0x47   :  { %1896 = vmatmul.mubr.msk.f32.gmra.mxu0 %vm107_vm0, %v63_v53  ;;  %1912 = vmatmul.mubr.msk.f32.gmra.mxu1 %vm107_vm0, %v79_v54  ;;  %v643_v53 = vld [vmem:[#allocation2 + $0x3b0] sm:$0xff]  ;;  %v638_v54 = vld [vmem:[#allocation2 + $0x388] sm:$0xff] }
  0x48   :  { %322 = vmatprep.mubr.f32.mxu0 %v2393_v0  ;;  %418 = vmatprep.mubr.f32.mxu1 %v2393_v0 }
  0x49   :  { %691 = vmatprep.subr.mxu1 %v554_v61  ;;  %948 = vmatprep.subr.mxu0 %v556_v62  ;;  %v635_v61 = vld [vmem:[#allocation2 + $0x370] sm:$0xff]  ;;  %v630_v62 = vld [vmem:[#allocation2 + $0x348] sm:$0xff] }
  0x4a   :  { %692 = vmatpush1.msra.mxu1 %v553_v63  ;;  %949 = vmatpush1.msra.mxu0 %v555_v1  ;;  %v632_v63 = vld [vmem:[#allocation2 + $0x358] sm:$0xff]  ;;  %v629_v1 = vld [vmem:[#allocation2 + $0x340] sm:$0xff] }
  0x4b   :  { %1897 = vmatmul.mubr.msk.f32.gmra.mxu0 %vm107_vm0, %v64_v59  ;;  %1913 = vmatmul.mubr.msk.f32.gmra.mxu1 %vm107_vm0, %v80_v60  ;;  %v636_v59 = vld [vmem:[#allocation2 + $0x378] sm:$0xff]  ;;  %v633_v60 = vld [vmem:[#allocation2 + $0x360] sm:$0xff] }
  0x4c   :  { %328 = vmatprep.mubr.f32.mxu0 %v2393_v0  ;;  %424 = vmatprep.mubr.f32.mxu1 %v2393_v0 }
  0x4d   :  { %693 = vmatprep.subr.mxu1 %v550_v4  ;;  %950 = vmatprep.subr.mxu0 %v552_v5  ;;  %v628_v4 = vld [vmem:[#allocation2 + $0x338] sm:$0xff]  ;;  %v625_v5 = vld [vmem:[#allocation2 + $0x320] sm:$0xff] }
  0x4e   :  { %694 = vmatpush1.msra.mxu1 %v549_v6  ;;  %951 = vmatpush1.msra.mxu0 %v551_v7  ;;  %v627_v6 = vld [vmem:[#allocation2 + $0x330] sm:$0xff]  ;;  %v622_v7 = vld [vmem:[#allocation2 + $0x308] sm:$0xff] }
  0x4f   :  { %1898 = vmatmul.mubr.msk.f32.gmra.mxu0 %vm107_vm0, %v65_v2  ;;  %1914 = vmatmul.mubr.msk.f32.gmra.mxu1 %vm107_vm0, %v81_v3  ;;  %v631_v2 = vld [vmem:[#allocation2 + $0x350] sm:$0xff]  ;;  %v626_v3 = vld [vmem:[#allocation2 + $0x328] sm:$0xff] }
  0x50   :  { %334 = vmatprep.mubr.f32.mxu0 %v2393_v0  ;;  %430 = vmatprep.mubr.f32.mxu1 %v2393_v0 }
  0x51   :  { %695 = vmatprep.subr.mxu1 %v546_v10  ;;  %952 = vmatprep.subr.mxu0 %v548_v11  ;;  %v623_v10 = vld [vmem:[#allocation2 + $0x310] sm:$0xff]  ;;  %v618_v11 = vld [vmem:[#allocation2 + $0x2e8] sm:$0xff] }
  0x52   :  { %696 = vmatpush1.msra.mxu1 %v545_v12  ;;  %953 = vmatpush1.msra.mxu0 %v547_v13  ;;  %v620_v12 = vld [vmem:[#allocation2 + $0x2f8] sm:$0xff]  ;;  %v617_v13 = vld [vmem:[#allocation2 + $0x2e0] sm:$0xff] }
  0x53   :  { %1899 = vmatmul.mubr.msk.f32.gmra.mxu0 %vm107_vm0, %v66_v8  ;;  %1915 = vmatmul.mubr.msk.f32.gmra.mxu1 %vm107_vm0, %v82_v9  ;;  %v624_v8 = vld [vmem:[#allocation2 + $0x318] sm:$0xff]  ;;  %v621_v9 = vld [vmem:[#allocation2 + $0x300] sm:$0xff] }
  0x54   :  { %340 = vmatprep.mubr.f32.mxu0 %v2393_v0  ;;  %436 = vmatprep.mubr.f32.mxu1 %v2393_v0 }
  0x55   :  { %697 = vmatprep.subr.mxu1 %v542_v16  ;;  %954 = vmatprep.subr.mxu0 %v544_v17  ;;  %v616_v16 = vld [vmem:[#allocation2 + $0x2d8] sm:$0xff]  ;;  %v613_v17 = vld [vmem:[#allocation2 + $0x2c0] sm:$0xff] }
  0x56   :  { %698 = vmatpush1.msra.mxu1 %v541_v18  ;;  %955 = vmatpush1.msra.mxu0 %v543_v19  ;;  %v615_v18 = vld [vmem:[#allocation2 + $0x2d0] sm:$0xff]  ;;  %v610_v19 = vld [vmem:[#allocation2 + $0x2a8] sm:$0xff] }
  0x57   :  { %1900 = vmatmul.mubr.msk.f32.gmra.mxu0 %vm107_vm0, %v67_v14  ;;  %1916 = vmatmul.mubr.msk.f32.gmra.mxu1 %vm107_vm0, %v83_v15  ;;  %v619_v14 = vld [vmem:[#allocation2 + $0x2f0] sm:$0xff]  ;;  %v614_v15 = vld [vmem:[#allocation2 + $0x2c8] sm:$0xff] }
  0x58   :  { %346 = vmatprep.mubr.f32.mxu0 %v2393_v0  ;;  %442 = vmatprep.mubr.f32.mxu1 %v2393_v0 }
  0x59   :  { %699 = vmatprep.subr.mxu1 %v538_v22  ;;  %956 = vmatprep.subr.mxu0 %v540_v23  ;;  %v611_v22 = vld [vmem:[#allocation2 + $0x2b0] sm:$0xff]  ;;  %v606_v23 = vld [vmem:[#allocation2 + $0x288] sm:$0xff] }
  0x5a   :  { %700 = vmatpush1.msra.mxu1 %v537_v24  ;;  %957 = vmatpush1.msra.mxu0 %v539_v25  ;;  %v608_v24 = vld [vmem:[#allocation2 + $0x298] sm:$0xff]  ;;  %v605_v25 = vld [vmem:[#allocation2 + $0x280] sm:$0xff] }
  0x5b   :  { %1901 = vmatmul.mubr.msk.f32.gmra.mxu0 %vm107_vm0, %v68_v20  ;;  %1917 = vmatmul.mubr.msk.f32.gmra.mxu1 %vm107_vm0, %v84_v21  ;;  %v612_v20 = vld [vmem:[#allocation2 + $0x2b8] sm:$0xff]  ;;  %v609_v21 = vld [vmem:[#allocation2 + $0x2a0] sm:$0xff] }
  0x5c   :  { %352 = vmatprep.mubr.f32.mxu0 %v2393_v0  ;;  %448 = vmatprep.mubr.f32.mxu1 %v2393_v0 }
  0x5d   :  { %701 = vmatprep.subr.mxu1 %v534_v28  ;;  %958 = vmatprep.subr.mxu0 %v536_v29  ;;  %v604_v28 = vld [vmem:[#allocation2 + $0x278] sm:$0xff]  ;;  %v601_v29 = vld [vmem:[#allocation2 + $0x260] sm:$0xff] }
  0x5e   :  { %702 = vmatpush1.msra.mxu1 %v533_v30  ;;  %959 = vmatpush1.msra.mxu0 %v535_v31  ;;  %v603_v30 = vld [vmem:[#allocation2 + $0x270] sm:$0xff]  ;;  %v598_v31 = vld [vmem:[#allocation2 + $0x248] sm:$0xff] }
  0x5f   :  { %1902 = vmatmul.mubr.msk.f32.gmra.mxu0 %vm107_vm0, %v69_v26  ;;  %1918 = vmatmul.mubr.msk.f32.gmra.mxu1 %vm107_vm0, %v85_v27  ;;  %v607_v26 = vld [vmem:[#allocation2 + $0x290] sm:$0xff]  ;;  %v602_v27 = vld [vmem:[#allocation2 + $0x268] sm:$0xff] }
  0x60   :  { %358 = vmatprep.mubr.f32.mxu0 %v2393_v0  ;;  %454 = vmatprep.mubr.f32.mxu1 %v2393_v0 }
  0x61   :  { %703 = vmatprep.subr.mxu1 %v530_v34  ;;  %960 = vmatprep.subr.mxu0 %v532_v35  ;;  %v599_v34 = vld [vmem:[#allocation2 + $0x250] sm:$0xff]  ;;  %v594_v35 = vld [vmem:[#allocation2 + $0x228] sm:$0xff] }
  0x62   :  { %704 = vmatpush1.msra.mxu1 %v529_v36  ;;  %961 = vmatpush1.msra.mxu0 %v531_v37  ;;  %v596_v36 = vld [vmem:[#allocation2 + $0x238] sm:$0xff]  ;;  %v593_v37 = vld [vmem:[#allocation2 + $0x220] sm:$0xff] }
  0x63   :  { %1903 = vmatmul.mubr.msk.f32.gmra.mxu0 %vm107_vm0, %v70_v32  ;;  %1919 = vmatmul.mubr.msk.f32.gmra.mxu1 %vm107_vm0, %v86_v33  ;;  %v600_v32 = vld [vmem:[#allocation2 + $0x258] sm:$0xff]  ;;  %v597_v33 = vld [vmem:[#allocation2 + $0x240] sm:$0xff] }
  0x64   :  { %705 = vmatprep.subr.mxu1 %v526_v38  ;;  %962 = vmatprep.subr.mxu0 %v528_v39  ;;  %v595_v38 = vld [vmem:[#allocation2 + $0x230] sm:$0xff]  ;;  %v590_v39 = vld [vmem:[#allocation2 + $0x208] sm:$0xff] }
  0x65   :  { %706 = vmatpush1.msra.mxu1 %v525_v40  ;;  %963 = vmatpush1.msra.mxu0 %v527_v41  ;;  %v592_v40 = vld [vmem:[#allocation2 + $0x218] sm:$0xff]  ;;  %v589_v41 = vld [vmem:[#allocation2 + $0x200] sm:$0xff] }
  0x66   :  { %707 = vmatprep.subr.mxu1 %v650_v42  ;;  %964 = vmatprep.subr.mxu0 %v652_v43  ;;  %v591_v42 = vld [vmem:[#allocation2 + $0x210] sm:$0xff]  ;;  %v97_v43 = vlaneseq }
  0x67   :  { %708 = vmatpush2.msra.mxu1 %v649_v44  ;;  %965 = vmatpush2.msra.mxu0 %v651_v45 }
  0x68   :  { %709 = vmatprep.subr.mxu1 %v646_v46  ;;  %966 = vmatprep.subr.mxu0 %v648_v47  ;;  %v2630_v44 = vshrl.u32 %v97_v43, 7  ;;  %v95_v46 = vld [vmem:[%s3045_s2] sm:$0x3] }
  0x69   :  { %710 = vmatpush2.msra.mxu1 %v645_v48  ;;  %967 = vmatpush2.msra.mxu0 %v647_v49 }
  0x6a   :  { %711 = vmatprep.subr.mxu1 %v642_v50  ;;  %968 = vmatprep.subr.mxu0 %v644_v51  ;;  %v99_v45 = vsub.s32 0, %v2630_v44  ;;  %v103_v47 = vsub.s32 1, %v2630_v44 }
  0x6b   :  { %712 = vmatpush2.msra.mxu1 %v641_v52  ;;  %969 = vmatpush2.msra.mxu0 %v643_v53 }
  0x6c   :  { %713 = vmatprep.subr.mxu1 %v638_v54  ;;  %970 = vmatprep.subr.mxu0 %v640_v55  ;;  %v2639_v48 = vrot.slane %v95_v46, %v99_v45  ;;  %v2643_v49 = vrot.slane %v95_v46, %v103_v47 }
  0x6d   :  { %714 = vmatpush2.msra.mxu1 %v637_v56  ;;  %971 = vmatpush2.msra.mxu0 %v639_v57 }
  0x6e   :  { %715 = vmatprep.subr.mxu1 %v634_v58  ;;  %972 = vmatprep.subr.mxu0 %v636_v59 }
  0x6f   :  { %716 = vmatpush2.msra.mxu1 %v633_v60  ;;  %973 = vmatpush2.msra.mxu0 %v635_v61 }
  0x70   :  { %717 = vmatprep.subr.mxu1 %v630_v62  ;;  %974 = vmatprep.subr.mxu0 %v632_v63 }
  0x71   :  { %718 = vmatpush2.msra.mxu1 %v629_v1  ;;  %975 = vmatpush2.msra.mxu0 %v631_v2 }
  0x72   :  { %719 = vmatprep.subr.mxu1 %v626_v3  ;;  %976 = vmatprep.subr.mxu0 %v628_v4 }
  0x73   :  { %720 = vmatpush2.msra.mxu1 %v625_v5  ;;  %977 = vmatpush2.msra.mxu0 %v627_v6 }
  0x74   :  { %721 = vmatprep.subr.mxu1 %v622_v7  ;;  %978 = vmatprep.subr.mxu0 %v624_v8 }
  0x75   :  { %722 = vmatpush2.msra.mxu1 %v621_v9  ;;  %979 = vmatpush2.msra.mxu0 %v623_v10 }
  0x76   :  { %723 = vmatprep.subr.mxu1 %v618_v11  ;;  %980 = vmatprep.subr.mxu0 %v620_v12 }
  0x77   :  { %724 = vmatpush2.msra.mxu1 %v617_v13  ;;  %981 = vmatpush2.msra.mxu0 %v619_v14  ;;  %v1332_v14 = vld [vmem:[#allocation5 + $0x78] sm:$0xff] }
  0x78   :  { %725 = vmatprep.subr.mxu1 %v614_v15  ;;  %982 = vmatprep.subr.mxu0 %v616_v16  ;;  %v1364_v15 = vld [vmem:[#allocation5 + $0x178] sm:$0xff] }
  0x79   :  { %726 = vmatpush2.msra.mxu1 %v613_v17  ;;  %983 = vmatpush2.msra.mxu0 %v615_v18 }
  0x7a   :  { %727 = vmatprep.subr.mxu1 %v610_v19  ;;  %984 = vmatprep.subr.mxu0 %v612_v20 }
  0x7b   :  { %728 = vmatpush2.msra.mxu1 %v609_v21  ;;  %985 = vmatpush2.msra.mxu0 %v611_v22 }
  0x7c   :  { %729 = vmatprep.subr.mxu1 %v606_v23  ;;  %986 = vmatprep.subr.mxu0 %v608_v24  ;;  %v1331_v23 = vld [vmem:[#allocation5 + $0x70] sm:$0xff] }
  0x7d   :  { %730 = vmatpush2.msra.mxu1 %v605_v25  ;;  %987 = vmatpush2.msra.mxu0 %v607_v26  ;;  %v1363_v24 = vld [vmem:[#allocation5 + $0x170] sm:$0xff] }
  0x7e   :  { %731 = vmatprep.subr.mxu1 %v602_v27  ;;  %988 = vmatprep.subr.mxu0 %v604_v28 }
  0x7f   :  { %732 = vmatpush2.msra.mxu1 %v601_v29  ;;  %989 = vmatpush2.msra.mxu0 %v603_v30 }
  0x80   :  { %733 = vmatprep.subr.mxu1 %v598_v31  ;;  %990 = vmatprep.subr.mxu0 %v600_v32  ;;  %v1330_v32 = vld [vmem:[#allocation5 + $0x68] sm:$0xff] }
  0x81   :  { %734 = vmatpush2.msra.mxu1 %v597_v33  ;;  %991 = vmatpush2.msra.mxu0 %v599_v34  ;;  %v1362_v33 = vld [vmem:[#allocation5 + $0x168] sm:$0xff] }
  0x82   :  { %735 = vmatprep.subr.mxu1 %v594_v35  ;;  %992 = vmatprep.subr.mxu0 %v596_v36 }
  0x83   :  { %736 = vmatpush2.msra.mxu1 %v593_v37  ;;  %993 = vmatpush2.msra.mxu0 %v595_v38 }
  0x84   :  { %737 = vmatprep.subr.mxu1 %v590_v39  ;;  %994 = vmatprep.subr.mxu0 %v592_v40 }
  0x85   :  { %738 = vmatpush2.msra.mxu1 %v589_v41  ;;  %995 = vmatpush2.msra.mxu0 %v591_v42  ;;  %v1329_v41 = vld [vmem:[#allocation5 + $0x60] sm:$0xff] }
  0x86   :  { %1388 = vmatprep.subr.mxu1 %v2393_v0  ;;  %1613 = vmatprep.subr.mxu0 %v2393_v0  ;;  %v1361_v42 = vld [vmem:[#allocation5 + $0x160] sm:$0xff] }
  0xe7   :  { %v270_v50 = vpop.f32.mrf.mxu0  ;;  %v2645_v51 = vpop.f32.mrf.mxu1 }
  0xe8   :  { %v271_v52 = vadd.f32 %v270_v50, %v2639_v48 }
  0xe9   :  { %v272_v53 = vpop.f32.mrf.mxu0  ;;  %v2648_v54 = vpop.f32.mrf.mxu1 }
  0xea   :  { %v273_v55 = vadd.f32 %v272_v53, %v2643_v49 }
  0xeb   :  { %v276_v56 = vpop.f32.mrf.mxu0  ;;  %v2651_v57 = vpop.f32.mrf.mxu1 }
  0xec   :  { %1937 = vtanh.f32 %v273_v55  ;;  %v277_v58 = vadd.f32 %v276_v56, %v2639_v48 }
  0xed   :  { %1939 = vtanh.f32 %v271_v52  ;;  %v278_v59 = vpop.f32.mrf.mxu0  ;;  %v2654_v60 = vpop.f32.mrf.mxu1 }
  0xee   :  { %v279_v61 = vadd.f32 %v278_v59, %v2643_v49  ;;  %v1360_v59 = vld [vmem:[#allocation5 + $0x158] sm:$0xff] }
  0xef   :  { %v282_v62 = vpop.f32.mrf.mxu0  ;;  %v2658_v2 = vpop.f32.mrf.mxu1 }
  0xf0   :  { %1941 = vtanh.f32 %v279_v61  ;;  %v283_v63 = vadd.f32 %v282_v62, %v2639_v48 }
  0xf1   :  { %1943 = vtanh.f32 %v277_v58  ;;  %v284_v1 = vpop.f32.mrf.mxu0  ;;  %v2662_v7 = vpop.f32.mrf.mxu1  ;;  %v1328_v58 = vld [vmem:[#allocation5 + $0x58] sm:$0xff] }
  0xf2   :  { %v285_v3 = vadd.f32 %v284_v1, %v2643_v49 }
  0xf3   :  { %v288_v4 = vpop.f32.mrf.mxu0  ;;  %v2666_v13 = vpop.f32.mrf.mxu1 }
  0xf4   :  { %1945 = vtanh.f32 %v285_v3  ;;  %v289_v5 = vadd.f32 %v288_v4, %v2639_v48 }
  0xf5   :  { %1947 = vtanh.f32 %v283_v63  ;;  %v290_v6 = vpop.f32.mrf.mxu0  ;;  %v2670_v22 = vpop.f32.mrf.mxu1 }
  0xf6   :  { %v291_v8 = vadd.f32 %v290_v6, %v2643_v49  ;;  %v1327_v6 = vld [vmem:[#allocation5 + $0x50] sm:$0xff] }
  0xf7   :  { %v294_v9 = vpop.f32.mrf.mxu0  ;;  %v2676_v31 = vpop.f32.mrf.mxu1 }
  0xf8   :  { %1949 = vtanh.f32 %v291_v8  ;;  %v295_v11 = vadd.f32 %v294_v9, %v2639_v48  ;;  %v1359_v8 = vld [vmem:[#allocation5 + $0x150] sm:$0xff] }
  0xf9   :  { %v1938_v10 = vpop.eup %1937  ;;  %1951 = vtanh.f32 %v289_v5  ;;  %v296_v12 = vpop.f32.mrf.mxu0 }
  0xfa   :  { %v1940_v16 = vpop.eup %1939  ;;  %v297_v17 = vadd.f32 %v296_v12, %v2643_v49  ;;  %739 = vmatprep.mubr.f32.mxu1 %v1938_v10  ;;  %996 = vmatprep.mubr.f32.mxu0 %v1938_v10  ;;  %v2682_v40 = vpop.f32.mrf.mxu1 }
  0xfb   :  { %v300_v18 = vpop.f32.mrf.mxu0  ;;  %740 = vmatmul.mubr.f32.vlgmr.msra.gmra.mxu1 %v1940_v16  ;;  %997 = vmatmul.mubr.f32.vlgmr.msra.gmra.mxu0 %v1940_v16 }
  0xfc   :  { %1953 = vtanh.f32 %v297_v17  ;;  %1389 = vmatpush1.msra.mxu1 %v1332_v14  ;;  %1614 = vmatpush1.msra.mxu0 %v1364_v15  ;;  %v301_v20 = vadd.f32 %v300_v18, %v2639_v48  ;;  %v2688_v56 = vpop.f32.mrf.mxu1  ;;  %v1326_v17 = vld [vmem:[#allocation5 + $0x48] sm:$0xff] }
  0xfd   :  { %v1942_v19 = vpop.eup %1941  ;;  %1955 = vtanh.f32 %v295_v11  ;;  %v302_v21 = vpop.f32.mrf.mxu0  ;;  %1390 = vmatprep.subr.mxu1 %v2393_v0  ;;  %1615 = vmatprep.subr.mxu0 %v2393_v0  ;;  %v1358_v18 = vld [vmem:[#allocation5 + $0x148] sm:$0xff] }
  0xfe   :  { %v1944_v25 = vpop.eup %1943  ;;  %v303_v26 = vadd.f32 %v302_v21, %v2643_v49  ;;  %745 = vmatprep.mubr.f32.mxu1 %v1942_v19  ;;  %1002 = vmatprep.mubr.f32.mxu0 %v1942_v19  ;;  %v2694_v5 = vpop.f32.mrf.mxu1 }
  0xff   :  { %v306_v27 = vpop.f32.mrf.mxu0  ;;  %746 = vmatmul.mubr.f32.gmra.mxu1 %v1944_v25  ;;  %1003 = vmatmul.mubr.f32.gmra.mxu0 %v1944_v25 }
 0x100   :  { %1957 = vtanh.f32 %v303_v26  ;;  %1391 = vmatpush1.msra.mxu1 %v1331_v23  ;;  %1616 = vmatpush1.msra.mxu0 %v1363_v24  ;;  %v307_v29 = vadd.f32 %v306_v27, %v2639_v48  ;;  %v2700_v16 = vpop.f32.mrf.mxu1  ;;  %v1325_v27 = vld [vmem:[#allocation5 + $0x40] sm:$0xff] }
 0x101   :  { %v1946_v28 = vpop.eup %1945  ;;  %1959 = vtanh.f32 %v301_v20  ;;  %v308_v30 = vpop.f32.mrf.mxu0  ;;  %1392 = vmatprep.subr.mxu1 %v2393_v0  ;;  %1617 = vmatprep.subr.mxu0 %v2393_v0 }
 0x102   :  { %v1948_v34 = vpop.eup %1947  ;;  %v309_v35 = vadd.f32 %v308_v30, %v2643_v49  ;;  %751 = vmatprep.mubr.f32.mxu1 %v1946_v28  ;;  %1008 = vmatprep.mubr.f32.mxu0 %v1946_v28  ;;  %v2706_v26 = vpop.f32.mrf.mxu1  ;;  %v1357_v28 = vld [vmem:[#allocation5 + $0x140] sm:$0xff] }
 0x103   :  { %v312_v36 = vpop.f32.mrf.mxu0  ;;  %752 = vmatmul.mubr.f32.gmra.mxu1 %v1948_v34  ;;  %1009 = vmatmul.mubr.f32.gmra.mxu0 %v1948_v34 }
 0x104   :  { %1961 = vtanh.f32 %v309_v35  ;;  %1393 = vmatpush1.msra.mxu1 %v1330_v32  ;;  %1618 = vmatpush1.msra.mxu0 %v1362_v33  ;;  %v313_v38 = vadd.f32 %v312_v36, %v2639_v48  ;;  %v2712_v36 = vpop.f32.mrf.mxu1 }
 0x105   :  { %v1950_v37 = vpop.eup %1949  ;;  %1963 = vtanh.f32 %v307_v29  ;;  %v314_v39 = vpop.f32.mrf.mxu0  ;;  %1394 = vmatprep.subr.mxu1 %v2393_v0  ;;  %1619 = vmatprep.subr.mxu0 %v2393_v0 }
 0x106   :  { %v1952_v43 = vpop.eup %1951  ;;  %v315_v46 = vadd.f32 %v314_v39, %v2643_v49  ;;  %757 = vmatprep.mubr.f32.mxu1 %v1950_v37  ;;  %1014 = vmatprep.mubr.f32.mxu0 %v1950_v37  ;;  %v1324_v37 = vld [vmem:[#allocation5 + $0x38] sm:$0xff] }
 0x107   :  { %v318_v50 = vpop.f32.mrf.mxu0  ;;  %758 = vmatmul.mubr.f32.gmra.mxu1 %v1952_v43  ;;  %1015 = vmatmul.mubr.f32.gmra.mxu0 %v1952_v43 }
 0x108   :  { %1965 = vtanh.f32 %v315_v46  ;;  %1395 = vmatpush1.msra.mxu1 %v1329_v41  ;;  %1620 = vmatpush1.msra.mxu0 %v1361_v42  ;;  %v319_v53 = vadd.f32 %v318_v50, %v2639_v48 }
 0x109   :  { %v1954_v52 = vpop.eup %1953  ;;  %1967 = vtanh.f32 %v313_v38  ;;  %v320_v55 = vpop.f32.mrf.mxu0  ;;  %1396 = vmatprep.subr.mxu1 %v2393_v0  ;;  %1621 = vmatprep.subr.mxu0 %v2393_v0  ;;  %v1356_v38 = vld [vmem:[#allocation5 + $0x138] sm:$0xff] }
 0x10a   :  { %v1956_v61 = vpop.eup %1955  ;;  %v321_v62 = vadd.f32 %v320_v55, %v2643_v49  ;;  %763 = vmatprep.mubr.f32.mxu1 %v1954_v52  ;;  %1020 = vmatprep.mubr.f32.mxu0 %v1954_v52  ;;  %v2718_v52 = vpop.f32.mrf.mxu1  ;;  %v1355_v55 = vld [vmem:[#allocation5 + $0x130] sm:$0xff] }
 0x10b   :  { %v324_v63 = vpop.f32.mrf.mxu0  ;;  %764 = vmatmul.mubr.f32.gmra.mxu1 %v1956_v61  ;;  %1021 = vmatmul.mubr.f32.gmra.mxu0 %v1956_v61 }
 0x10c   :  { %1969 = vtanh.f32 %v321_v62  ;;  %1397 = vmatpush1.msra.mxu1 %v1328_v58  ;;  %1622 = vmatpush1.msra.mxu0 %v1360_v59  ;;  %v325_v3 = vadd.f32 %v324_v63, %v2639_v48 }
 0x10d   :  { %v1958_v1 = vpop.eup %1957  ;;  %1971 = vtanh.f32 %v319_v53  ;;  %v326_v4 = vpop.f32.mrf.mxu0  ;;  %1398 = vmatprep.subr.mxu1 %v2393_v0  ;;  %1623 = vmatprep.subr.mxu0 %v2393_v0  ;;  %v1323_v53 = vld [vmem:[#allocation5 + $0x30] sm:$0xff] }
 0x10e   :  { %v1960_v9 = vpop.eup %1959  ;;  %v327_v10 = vadd.f32 %v326_v4, %v2643_v49  ;;  %769 = vmatprep.mubr.f32.mxu1 %v1958_v1  ;;  %1026 = vmatprep.mubr.f32.mxu0 %v1958_v1  ;;  %v1322_v4 = vld [vmem:[#allocation5 + $0x28] sm:$0xff] }
 0x10f   :  { %v330_v11 = vpop.f32.mrf.mxu0  ;;  %770 = vmatmul.mubr.f32.gmra.mxu1 %v1960_v9  ;;  %1027 = vmatmul.mubr.f32.gmra.mxu0 %v1960_v9 }
 0x110   :  { %1973 = vtanh.f32 %v327_v10  ;;  %1399 = vmatpush1.msra.mxu1 %v1327_v6  ;;  %1624 = vmatpush1.msra.mxu0 %v1359_v8  ;;  %v331_v14 = vadd.f32 %v330_v11, %v2639_v48  ;;  %v1354_v6 = vld [vmem:[#allocation5 + $0x128] sm:$0xff]  ;;  %v369_v11 = vadd.f32 %v2648_v54, %v2643_v49  ;;  %v375_v54 = vadd.f32 %v2654_v60, %v2643_v49 }
 0x111   :  { %v1962_v12 = vpop.eup %1961  ;;  %1975 = vtanh.f32 %v325_v3  ;;  %v332_v15 = vpop.f32.mrf.mxu0  ;;  %1400 = vmatprep.subr.mxu1 %v2393_v0  ;;  %1625 = vmatprep.subr.mxu0 %v2393_v0  ;;  %v381_v60 = vadd.f32 %v2662_v7, %v2643_v49  ;;  %v387_v7 = vadd.f32 %v2670_v22, %v2643_v49 }
 0x112   :  { %v1964_v19 = vpop.eup %1963  ;;  %v333_v20 = vadd.f32 %v332_v15, %v2643_v49  ;;  %775 = vmatprep.mubr.f32.mxu1 %v1962_v12  ;;  %1032 = vmatprep.mubr.f32.mxu0 %v1962_v12  ;;  %v2724_v3 = vpop.f32.mrf.mxu1 }
 0x113   :  { %v336_v21 = vpop.f32.mrf.mxu0  ;;  %776 = vmatmul.mubr.f32.gmra.mxu1 %v1964_v19  ;;  %1033 = vmatmul.mubr.f32.gmra.mxu0 %v1964_v19  ;;  %v1353_v19 = vld [vmem:[#allocation5 + $0x120] sm:$0xff] }
 0x114   :  { %1977 = vtanh.f32 %v333_v20  ;;  %1401 = vmatpush1.msra.mxu1 %v1326_v17  ;;  %1626 = vmatpush1.msra.mxu0 %v1358_v18  ;;  %v337_v24 = vadd.f32 %v336_v21, %v2639_v48  ;;  %v2732_v17 = vpop.f32.mrf.mxu1  ;;  %v1321_v18 = vld [vmem:[#allocation5 + $0x20] sm:$0xff] }
 0x115   :  { %v1966_v23 = vpop.eup %1965  ;;  %1979 = vtanh.f32 %v331_v14  ;;  %v338_v25 = vpop.f32.mrf.mxu0  ;;  %1402 = vmatprep.subr.mxu1 %v2393_v0  ;;  %1627 = vmatprep.subr.mxu0 %v2393_v0 }
 0x116   :  { %v1968_v29 = vpop.eup %1967  ;;  %v339_v30 = vadd.f32 %v338_v25, %v2643_v49  ;;  %781 = vmatprep.mubr.f32.mxu1 %v1966_v23  ;;  %1038 = vmatprep.mubr.f32.mxu0 %v1966_v23  ;;  %v2741_v25 = vpop.f32.mrf.mxu1 }
 0x117   :  { %v342_v32 = vpop.f32.mrf.mxu0  ;;  %782 = vmatmul.mubr.f32.gmra.mxu1 %v1968_v29  ;;  %1039 = vmatmul.mubr.f32.gmra.mxu0 %v1968_v29 }
 0x118   :  { %1981 = vtanh.f32 %v339_v30  ;;  %1403 = vmatpush1.msra.mxu1 %v1325_v27  ;;  %1628 = vmatpush1.msra.mxu0 %v1357_v28  ;;  %v343_v34 = vadd.f32 %v342_v32, %v2639_v48  ;;  %v1320_v27 = vld [vmem:[#allocation5 + $0x18] sm:$0xff]  ;;  %v373_v30 = vadd.f32 %v2651_v57, %v2639_v48  ;;  %v2749_v32 = vpop.f32.mrf.mxu1 }
 0x119   :  { %v1970_v33 = vpop.eup %1969  ;;  %1983 = vtanh.f32 %v337_v24  ;;  %v344_v35 = vpop.f32.mrf.mxu0  ;;  %1404 = vmatprep.subr.mxu1 %v2393_v0  ;;  %1629 = vmatprep.subr.mxu0 %v2393_v0  ;;  %v367_v24 = vadd.f32 %v2645_v51, %v2639_v48  ;;  %v1352_v28 = vld [vmem:[#allocation5 + $0x118] sm:$0xff] }
 0x11a   :  { %v1972_v39 = vpop.eup %1971  ;;  %v345_v41 = vadd.f32 %v344_v35, %v2643_v49  ;;  %787 = vmatprep.mubr.f32.mxu1 %v1970_v33  ;;  %1044 = vmatprep.mubr.f32.mxu0 %v1970_v33  ;;  %v1319_v33 = vld [vmem:[#allocation5 + $0x10] sm:$0xff] }
 0x11b   :  { %v348_v42 = vpop.f32.mrf.mxu0  ;;  %788 = vmatmul.mubr.f32.gmra.mxu1 %v1972_v39  ;;  %1045 = vmatmul.mubr.f32.gmra.mxu0 %v1972_v39  ;;  %v1318_v39 = vld [vmem:[#allocation5 + $0x8] sm:$0xff] }
 0x11c   :  { %1985 = vtanh.f32 %v345_v41  ;;  %1405 = vmatpush1.msra.mxu1 %v1324_v37  ;;  %1630 = vmatpush1.msra.mxu0 %v1356_v38  ;;  %v349_v46 = vadd.f32 %v348_v42, %v2639_v48  ;;  %v379_v37 = vadd.f32 %v2658_v2, %v2639_v48  ;;  %v2757_v38 = vpop.f32.mrf.mxu1  ;;  %v1350_v41 = vld [vmem:[#allocation5 + $0x108] sm:$0xff] }
 0x11d   :  { %v1974_v43 = vpop.eup %1973  ;;  %1987 = vtanh.f32 %v343_v34  ;;  %v350_v50 = vpop.f32.mrf.mxu0  ;;  %1406 = vmatprep.subr.mxu1 %v2393_v0  ;;  %1631 = vmatprep.subr.mxu0 %v2393_v0  ;;  %v1351_v34 = vld [vmem:[#allocation5 + $0x110] sm:$0xff] }
 0x11e   :  { %v1976_v58 = vpop.eup %1975  ;;  %v351_v59 = vadd.f32 %v350_v50, %v2643_v49  ;;  %793 = vmatprep.mubr.f32.mxu1 %v1974_v43  ;;  %1050 = vmatprep.mubr.f32.mxu0 %v1974_v43  ;;  %v393_v43 = vadd.f32 %v2682_v40, %v2643_v49  ;;  %v2765_v50 = vpop.f32.mrf.mxu1  ;;  %v399_v40 = vadd.f32 %v2694_v5, %v2643_v49 }
 0x11f   :  { %v354_v61 = vpop.f32.mrf.mxu0  ;;  %794 = vmatmul.mubr.f32.gmra.mxu1 %v1976_v58  ;;  %1051 = vmatmul.mubr.f32.gmra.mxu0 %v1976_v58  ;;  %v1349_v58 = vld [vmem:[#allocation5 + $0x100] sm:$0xff]  ;;  %v405_v5 = vadd.f32 %v2706_v26, %v2643_v49  ;;  %v411_v26 = vadd.f32 %v2718_v52, %v2643_v49  ;;  %v417_v52 = vadd.f32 %v2732_v17, %v2643_v49 }
 0x120   :  { %1989 = vtanh.f32 %v351_v59  ;;  %1407 = vmatpush1.msra.mxu1 %v1323_v53  ;;  %1632 = vmatpush1.msra.mxu0 %v1355_v55  ;;  %v355_v63 = vadd.f32 %v354_v61, %v2639_v48  ;;  %v1317_v55 = vld [vmem:[#allocation5] sm:$0xff]  ;;  %v391_v59 = vadd.f32 %v2676_v31, %v2639_v48  ;;  %v2773_v61 = vpop.f32.mrf.mxu1  ;;  %v423_v17 = vadd.f32 %v2749_v32, %v2643_v49 }
 0x121   :  { %v1978_v62 = vpop.eup %1977  ;;  %1991 = vtanh.f32 %v349_v46  ;;  %v356_v1 = vpop.f32.mrf.mxu0  ;;  %1408 = vmatprep.subr.mxu1 %v2393_v0  ;;  %1633 = vmatprep.subr.mxu0 %v2393_v0  ;;  %v385_v46 = vadd.f32 %v2666_v13, %v2639_v48 }
 0x122   :  { %v1980_v8 = vpop.eup %1979  ;;  %v357_v9 = vadd.f32 %v356_v1, %v2643_v49  ;;  %799 = vmatprep.mubr.f32.mxu1 %v1978_v62  ;;  %1056 = vmatprep.mubr.f32.mxu0 %v1978_v62  ;;  %v1380_v1 = vld [vmem:[#allocation5 + $0x1f8] sm:$0xff] }
 0x123   :  { %v360_v10 = vpop.f32.mrf.mxu0  ;;  %800 = vmatmul.mubr.f32.gmra.mxu1 %v1980_v8  ;;  %1057 = vmatmul.mubr.f32.gmra.mxu0 %v1980_v8 }
 0x124   :  { %1993 = vtanh.f32 %v357_v9  ;;  %1409 = vmatpush1.msra.mxu1 %v1322_v4  ;;  %1634 = vmatpush1.msra.mxu0 %v1354_v6  ;;  %v361_v14 = vadd.f32 %v360_v10, %v2639_v48  ;;  %v397_v4 = vadd.f32 %v2688_v56, %v2639_v48  ;;  %v2781_v6 = vpop.f32.mrf.mxu1  ;;  %v1347_v9 = vld [vmem:[#allocation5 + $0xf0] sm:$0xff] }
 0x125   :  { %v1982_v12 = vpop.eup %1981  ;;  %1995 = vtanh.f32 %v355_v63  ;;  %v362_v15 = vpop.f32.mrf.mxu0  ;;  %1410 = vmatprep.subr.mxu1 %v2393_v0  ;;  %1635 = vmatprep.subr.mxu0 %v2393_v0  ;;  %v1348_v63 = vld [vmem:[#allocation5 + $0xf8] sm:$0xff]  ;;  %v1379_v10 = vld [vmem:[#allocation5 + $0x1f0] sm:$0xff] }
 0x126   :  { %v1984_v20 = vpop.eup %1983  ;;  %v363_v21 = vadd.f32 %v362_v15, %v2643_v49  ;;  %805 = vmatprep.mubr.f32.mxu1 %v1982_v12  ;;  %1062 = vmatprep.mubr.f32.mxu0 %v1982_v12  ;;  %1997 = vtanh.f32 %v369_v11  ;;  %v403_v11 = vadd.f32 %v2700_v16, %v2639_v48  ;;  %v2789_v12 = vpop.f32.mrf.mxu1  ;;  %v1346_v15 = vld [vmem:[#allocation5 + $0xe8] sm:$0xff] }
 0x127   :  { %806 = vmatmul.mubr.f32.gmra.mxu1 %v1984_v20  ;;  %1063 = vmatmul.mubr.f32.gmra.mxu0 %v1984_v20 }
 0x128   :  { %1999 = vtanh.f32 %v363_v21  ;;  %1411 = vmatpush1.msra.mxu1 %v1321_v18  ;;  %1636 = vmatpush1.msra.mxu0 %v1353_v19  ;;  %v1378_v18 = vld [vmem:[#allocation5 + $0x1e8] sm:$0xff]  ;;  %v409_v19 = vadd.f32 %v2712_v36, %v2639_v48  ;;  %v2797_v20 = vpop.f32.mrf.mxu1 }
 0x129   :  { %v1986_v23 = vpop.eup %1985  ;;  %2001 = vtanh.f32 %v361_v14  ;;  %1412 = vmatprep.subr.mxu1 %v2393_v0  ;;  %1637 = vmatprep.subr.mxu0 %v2393_v0 }
 0x12a   :  { %v1988_v29 = vpop.eup %1987  ;;  %811 = vmatprep.mubr.f32.mxu1 %v1986_v23  ;;  %1068 = vmatprep.mubr.f32.mxu0 %v1986_v23  ;;  %2003 = vtanh.f32 %v375_v54  ;;  %v1345_v54 = vld [vmem:[#allocation5 + $0xe0] sm:$0xff] }
 0x12b   :  { %812 = vmatmul.mubr.f32.gmra.mxu1 %v1988_v29  ;;  %1069 = vmatmul.mubr.f32.gmra.mxu0 %v1988_v29  ;;  %2005 = vtanh.f32 %v367_v24  ;;  %v1377_v23 = vld [vmem:[#allocation5 + $0x1e0] sm:$0xff]  ;;  %v415_v24 = vadd.f32 %v2724_v3, %v2639_v48  ;;  %v1344_v29 = vld [vmem:[#allocation5 + $0xd8] sm:$0xff] }
 0x12c   :  { %1413 = vmatpush1.msra.mxu1 %v1320_v27  ;;  %1638 = vmatpush1.msra.mxu0 %v1352_v28  ;;  %2007 = vtanh.f32 %v381_v60  ;;  %v2805_v27 = vpop.f32.mrf.mxu1  ;;  %v1376_v60 = vld [vmem:[#allocation5 + $0x1d8] sm:$0xff] }
 0x12d   :  { %v1990_v51 = vpop.eup %1989  ;;  %1414 = vmatprep.subr.mxu1 %v2393_v0  ;;  %1639 = vmatprep.subr.mxu0 %v2393_v0  ;;  %2009 = vtanh.f32 %v373_v30  ;;  %v421_v30 = vadd.f32 %v2741_v25, %v2639_v48  ;;  %v427_v25 = vadd.f32 %v2757_v38, %v2639_v48 }
 0x12e   :  { %v1992_v35 = vpop.eup %1991  ;;  %817 = vmatprep.mubr.f32.mxu1 %v1990_v51  ;;  %1074 = vmatprep.mubr.f32.mxu0 %v1990_v51  ;;  %2011 = vtanh.f32 %v387_v7  ;;  %v429_v51 = vadd.f32 %v2765_v50, %v2643_v49  ;;  %v446_v32 = vpop.f32.mrf.mxu1  ;;  %v435_v7 = vadd.f32 %v2781_v6, %v2643_v49  ;;  %v1341_v50 = vld [vmem:[#allocation5 + $0xc0] sm:$0xff]  ;;  %v1339_v6 = vld [vmem:[#allocation5 + $0xb0] sm:$0xff] }
 0x12f   :  { %818 = vmatmul.mubr.f32.gmra.mxu1 %v1992_v35  ;;  %1075 = vmatmul.mubr.f32.gmra.mxu0 %v1992_v35  ;;  %2013 = vtanh.f32 %v379_v37  ;;  %v1375_v35 = vld [vmem:[#allocation5 + $0x1d0] sm:$0xff] }
 0x130   :  { %1415 = vmatpush1.msra.mxu1 %v1319_v33  ;;  %1640 = vmatpush1.msra.mxu0 %v1351_v34  ;;  %2015 = vtanh.f32 %v393_v43  ;;  %v1343_v34 = vld [vmem:[#allocation5 + $0xd0] sm:$0xff]  ;;  %v2819_v37 = vpop.f32.mrf.mxu1  ;;  %v433_v43 = vadd.f32 %v2773_v61, %v2639_v48  ;;  %v1340_v61 = vld [vmem:[#allocation5 + $0xb8] sm:$0xff] }
 0x131   :  { %v1994_v57 = vpop.eup %1993  ;;  %1416 = vmatprep.subr.mxu1 %v2393_v0  ;;  %1641 = vmatprep.subr.mxu0 %v2393_v0  ;;  %2017 = vtanh.f32 %v385_v46 }
 0x132   :  { %v1996_v42 = vpop.eup %1995  ;;  %823 = vmatprep.mubr.f32.mxu1 %v1994_v57  ;;  %1080 = vmatprep.mubr.f32.mxu0 %v1994_v57  ;;  %2019 = vtanh.f32 %v399_v40  ;;  %v439_v40 = vadd.f32 %v2789_v12, %v2639_v48  ;;  %v1370_v12 = vld [vmem:[#allocation5 + $0x1a8] sm:$0xff] }
 0x133   :  { %824 = vmatmul.mubr.f32.gmra.mxu1 %v1996_v42  ;;  %1081 = vmatmul.mubr.f32.gmra.mxu0 %v1996_v42  ;;  %v1998_v22 = vpop.eup %1997  ;;  %2021 = vtanh.f32 %v391_v59  ;;  %v1374_v42 = vld [vmem:[#allocation5 + $0x1c8] sm:$0xff] }
 0x134   :  { %1417 = vmatpush1.msra.mxu1 %v1318_v39  ;;  %1642 = vmatpush1.msra.mxu0 %v1350_v41  ;;  %2023 = vtanh.f32 %v405_v5  ;;  %v1342_v41 = vld [vmem:[#allocation5 + $0xc8] sm:$0xff]  ;;  %v445_v5 = vadd.f32 %v2805_v27, %v2639_v48 }
 0x135   :  { %v2000_v2 = vpop.eup %1999  ;;  %1418 = vmatprep.subr.mxu1 %v2393_v0  ;;  %1643 = vmatprep.subr.mxu0 %v2393_v0  ;;  %2025 = vtanh.f32 %v397_v4  ;;  %v1334_v27 = vld [vmem:[#allocation5 + $0x88] sm:$0xff] }
 0x136   :  { %v2002_v53 = vpop.eup %2001  ;;  %829 = vmatprep.mubr.f32.mxu1 %v2000_v2  ;;  %1086 = vmatprep.mubr.f32.mxu0 %v2000_v2  ;;  %2027 = vtanh.f32 %v411_v26  ;;  %v452_v2 = vpop.f32.mrf.mxu1  ;;  %v451_v26 = vadd.f32 %v2819_v37, %v2639_v48 }
 0x137   :  { %830 = vmatmul.mubr.f32.gmra.mxu1 %v2002_v53  ;;  %1087 = vmatmul.mubr.f32.gmra.mxu0 %v2002_v53  ;;  %v2004_v13 = vpop.eup %2003  ;;  %2029 = vtanh.f32 %v403_v11  ;;  %v1373_v53 = vld [vmem:[#allocation5 + $0x1c0] sm:$0xff]  ;;  %v1338_v11 = vld [vmem:[#allocation5 + $0xa8] sm:$0xff] }
 0x138   :  { %835 = vmatprep.mubr.f32.mxu1 %v1998_v22  ;;  %1092 = vmatprep.mubr.f32.mxu0 %v1998_v22  ;;  %v2006_v62 = vpop.eup %2005  ;;  %2031 = vtanh.f32 %v417_v52  ;;  %v441_v22 = vadd.f32 %v2797_v20, %v2643_v49  ;;  %v1369_v52 = vld [vmem:[#allocation5 + $0x1a0] sm:$0xff]  ;;  %v1368_v20 = vld [vmem:[#allocation5 + $0x198] sm:$0xff] }
 0x139   :  { %1419 = vmatpush1.msra.mxu1 %v1317_v55  ;;  %1644 = vmatpush1.msra.mxu0 %v1349_v58  ;;  %v2008_v31 = vpop.eup %2007  ;;  %2033 = vtanh.f32 %v409_v19  ;;  %v447_v55 = vadd.f32 %v446_v32, %v2643_v49  ;;  %v669_v32 = vsub.s32 3, %v2630_v44 }
 0x13a   :  { %1420 = vmatprep.subr.mxu1 %v2393_v0  ;;  %1645 = vmatprep.subr.mxu0 %v2393_v0  ;;  %v2010_v8 = vpop.eup %2009  ;;  %2035 = vtanh.f32 %v423_v17  ;;  %v1367_v17 = vld [vmem:[#allocation5 + $0x190] sm:$0xff] }
 0x13b   :  { %836 = vmatmul.mubr.f32.gmra.mxu1 %v2006_v62  ;;  %1093 = vmatmul.mubr.f32.gmra.mxu0 %v2006_v62  ;;  %v2012_v56 = vpop.eup %2011  ;;  %2037 = vtanh.f32 %v415_v24  ;;  %v1372_v62 = vld [vmem:[#allocation5 + $0x1b8] sm:$0xff] }
 0x13c   :  { %841 = vmatprep.mubr.f32.mxu1 %v2004_v13  ;;  %1098 = vmatprep.mubr.f32.mxu0 %v2004_v13  ;;  %v2014_v14 = vpop.eup %2013  ;;  %2039 = vtanh.f32 %v429_v51  ;;  %v456_v13 = vpop.f32.mrf.mxu1 }
 0x13d   :  { %1421 = vmatpush2.msra.mxu1 %v1348_v63  ;;  %1646 = vmatpush2.msra.mxu0 %v1380_v1  ;;  %v2016_v16 = vpop.eup %2015  ;;  %2041 = vtanh.f32 %v421_v30  ;;  %v453_v63 = vadd.f32 %v452_v2, %v2643_v49  ;;  %v665_v30 = vsub.s32 2, %v2630_v44 }
 0x13e   :  { %1422 = vmatprep.subr.mxu1 %v2393_v0  ;;  %1647 = vmatprep.subr.mxu0 %v2393_v0  ;;  %v2018_v21 = vpop.eup %2017  ;;  %2043 = vtanh.f32 %v435_v7 }
 0x13f   :  { %842 = vmatmul.mubr.f32.gmra.mxu1 %v2010_v8  ;;  %1099 = vmatmul.mubr.f32.gmra.mxu0 %v2010_v8  ;;  %v2020_v36 = vpop.eup %2019  ;;  %2045 = vtanh.f32 %v427_v25  ;;  %v1371_v8 = vld [vmem:[#allocation5 + $0x1b0] sm:$0xff] }
 0x140   :  { %847 = vmatprep.mubr.f32.mxu1 %v2008_v31  ;;  %1104 = vmatprep.mubr.f32.mxu0 %v2008_v31  ;;  %v2022_v28 = vpop.eup %2021  ;;  %2047 = vtanh.f32 %v441_v22  ;;  %v458_v31 = vpop.f32.mrf.mxu1 }
 0x141   :  { %1423 = vmatpush2.msra.mxu1 %v1347_v9  ;;  %1648 = vmatpush2.msra.mxu0 %v1379_v10  ;;  %v2024_v3 = vpop.eup %2023  ;;  %2049 = vtanh.f32 %v433_v43  ;;  %v459_v9 = vadd.f32 %v458_v31, %v2643_v49 }
 0x142   :  { %1424 = vmatprep.subr.mxu1 %v2393_v0  ;;  %1649 = vmatprep.subr.mxu0 %v2393_v0  ;;  %v2026_v33 = vpop.eup %2025  ;;  %2051 = vtanh.f32 %v447_v55 }
 0x143   :  { %848 = vmatmul.mubr.f32.gmra.mxu1 %v2014_v14  ;;  %1105 = vmatmul.mubr.f32.gmra.mxu0 %v2014_v14  ;;  %v2028_v57 = vpop.eup %2027  ;;  %2053 = vtanh.f32 %v439_v40  ;;  %v457_v14 = vadd.f32 %v456_v13, %v2639_v48  ;;  %v1336_v48 = vld [vmem:[#allocation5 + $0x98] sm:$0xff] }
 0x144   :  { %853 = vmatprep.mubr.f32.mxu1 %v2012_v56  ;;  %1110 = vmatprep.mubr.f32.mxu0 %v2012_v56  ;;  %v2030_v39 = vpop.eup %2029  ;;  %2055 = vtanh.f32 %v453_v63 }
 0x145   :  { %1425 = vmatpush2.msra.mxu1 %v1346_v15  ;;  %1650 = vmatpush2.msra.mxu0 %v1378_v18  ;;  %v2032_v38 = vpop.eup %2031  ;;  %2057 = vtanh.f32 %v445_v5  ;;  %v1337_v18 = vld [vmem:[#allocation5 + $0xa0] sm:$0xff] }
 0x146   :  { %1426 = vmatprep.subr.mxu1 %v2393_v0  ;;  %1651 = vmatprep.subr.mxu0 %v2393_v0  ;;  %v2034_v46 = vpop.eup %2033  ;;  %2059 = vtanh.f32 %v459_v9 }
 0x147   :  { %854 = vmatmul.mubr.f32.gmra.mxu1 %v2018_v21  ;;  %1111 = vmatmul.mubr.f32.gmra.mxu0 %v2018_v21  ;;  %v2036_v58 = vpop.eup %2035  ;;  %2061 = vtanh.f32 %v451_v26 }
 0x148   :  { %859 = vmatprep.mubr.f32.mxu1 %v2016_v16  ;;  %1116 = vmatprep.mubr.f32.mxu0 %v2016_v16  ;;  %v2038_v59 = vpop.eup %2037  ;;  %2063 = vtanh.f32 %v457_v14 }
 0x149   :  { %1427 = vmatpush2.msra.mxu1 %v1345_v54  ;;  %1652 = vmatpush2.msra.mxu0 %v1377_v23  ;;  %v2040_v1 = vpop.eup %2039  ;;  %v1335_v23 = vld [vmem:[#allocation5 + $0x90] sm:$0xff] }
 0x14a   :  { %1428 = vmatprep.subr.mxu1 %v2393_v0  ;;  %1653 = vmatprep.subr.mxu0 %v2393_v0  ;;  %v2042_v4 = vpop.eup %2041 }
 0x14b   :  { %860 = vmatmul.mubr.f32.gmra.mxu1 %v2022_v28  ;;  %1117 = vmatmul.mubr.f32.gmra.mxu0 %v2022_v28  ;;  %v2044_v10 = vpop.eup %2043  ;;  %v1366_v28 = vld [vmem:[#allocation5 + $0x188] sm:$0xff] }
 0x14c   :  { %865 = vmatprep.mubr.f32.mxu1 %v2020_v36  ;;  %1122 = vmatprep.mubr.f32.mxu0 %v2020_v36  ;;  %v2046_v56 = vpop.eup %2045 }
 0x14d   :  { %1429 = vmatpush2.msra.mxu1 %v1344_v29  ;;  %1654 = vmatpush2.msra.mxu0 %v1376_v60  ;;  %v2048_v49 = vpop.eup %2047  ;;  %v1333_v29 = vld [vmem:[#allocation5 + $0x80] sm:$0xff] }
 0x14e   :  { %1430 = vmatprep.subr.mxu1 %v2393_v0  ;;  %1655 = vmatprep.subr.mxu0 %v2393_v0  ;;  %v2050_v15 = vpop.eup %2049  ;;  %v1365_v60 = vld [vmem:[#allocation5 + $0x180] sm:$0xff] }
 0x14f   :  { %866 = vmatmul.mubr.f32.gmra.mxu1 %v2026_v33  ;;  %1123 = vmatmul.mubr.f32.gmra.mxu0 %v2026_v33  ;;  %v2052_v16 = vpop.eup %2051 }
 0x150   :  { %871 = vmatprep.mubr.f32.mxu1 %v2024_v3  ;;  %1128 = vmatprep.mubr.f32.mxu0 %v2024_v3  ;;  %v2054_v19 = vpop.eup %2053  ;;  %v653_v3 = vld [vmem:[%s3047_s4] sm:$0xf] }
 0x151   :  { %1431 = vmatpush2.msra.mxu1 %v1343_v34  ;;  %1656 = vmatpush2.msra.mxu0 %v1375_v35  ;;  %v2056_v21 = vpop.eup %2055  ;;  %v2862_v33 = vrot.slane %v653_v3, %v99_v45  ;;  %v2864_v34 = vrot.slane %v653_v3, %v665_v30  ;;  %v2870_v35 = vrot.slane %v653_v3, %v669_v32 }
 0x152   :  { %1432 = vmatprep.subr.mxu1 %v2393_v0  ;;  %1657 = vmatprep.subr.mxu0 %v2393_v0  ;;  %v2058_v54 = vpop.eup %2057 }
 0x153   :  { %872 = vmatmul.mubr.f32.gmra.mxu1 %v2030_v39  ;;  %1129 = vmatmul.mubr.f32.gmra.mxu0 %v2030_v39  ;;  %v2060_v36 = vpop.eup %2059 }
 0x154   :  { %877 = vmatprep.mubr.f32.mxu1 %v2028_v57  ;;  %1134 = vmatprep.mubr.f32.mxu0 %v2028_v57  ;;  %v2062_v24 = vpop.eup %2061 }
 0x155   :  { %1433 = vmatpush2.msra.mxu1 %v1342_v41  ;;  %1658 = vmatpush2.msra.mxu0 %v1374_v42  ;;  %v2064_v51 = vpop.eup %2063 }
 0x156   :  { %1434 = vmatprep.subr.mxu1 %v2393_v0  ;;  %1659 = vmatprep.subr.mxu0 %v2393_v0 }
 0x157   :  { %878 = vmatmul.mubr.f32.gmra.mxu1 %v2034_v46  ;;  %1135 = vmatmul.mubr.f32.gmra.mxu0 %v2034_v46 }
 0x158   :  { %883 = vmatprep.mubr.f32.mxu1 %v2032_v38  ;;  %1140 = vmatprep.mubr.f32.mxu0 %v2032_v38 }
 0x159   :  { %1435 = vmatpush2.msra.mxu1 %v1341_v50  ;;  %1660 = vmatpush2.msra.mxu0 %v1373_v53 }
 0x15a   :  { %1436 = vmatprep.subr.mxu1 %v2393_v0  ;;  %1661 = vmatprep.subr.mxu0 %v2393_v0 }
 0x15b   :  { %884 = vmatmul.mubr.f32.gmra.mxu1 %v2038_v59  ;;  %1141 = vmatmul.mubr.f32.gmra.mxu0 %v2038_v59 }
 0x15c   :  { %889 = vmatprep.mubr.f32.mxu1 %v2036_v58  ;;  %1146 = vmatprep.mubr.f32.mxu0 %v2036_v58 }
 0x15d   :  { %1437 = vmatpush2.msra.mxu1 %v1340_v61  ;;  %1662 = vmatpush2.msra.mxu0 %v1372_v62 }
 0x15e   :  { %1438 = vmatprep.subr.mxu1 %v2393_v0  ;;  %1663 = vmatprep.subr.mxu0 %v2393_v0 }
 0x15f   :  { %890 = vmatmul.mubr.f32.gmra.mxu1 %v2042_v4  ;;  %1147 = vmatmul.mubr.f32.gmra.mxu0 %v2042_v4 }
 0x160   :  { %895 = vmatprep.mubr.f32.mxu1 %v2040_v1  ;;  %1152 = vmatprep.mubr.f32.mxu0 %v2040_v1 }
 0x161   :  { %1439 = vmatpush2.msra.mxu1 %v1339_v6  ;;  %1664 = vmatpush2.msra.mxu0 %v1371_v8 }
 0x162   :  { %1440 = vmatprep.subr.mxu1 %v2393_v0  ;;  %1665 = vmatprep.subr.mxu0 %v2393_v0 }
 0x163   :  { %896 = vmatmul.mubr.f32.gmra.mxu1 %v2046_v56  ;;  %1153 = vmatmul.mubr.f32.gmra.mxu0 %v2046_v56 }
 0x164   :  { %901 = vmatprep.mubr.f32.mxu1 %v2044_v10  ;;  %1158 = vmatprep.mubr.f32.mxu0 %v2044_v10 }
 0x165   :  { %1441 = vmatpush2.msra.mxu1 %v1338_v11  ;;  %1666 = vmatpush2.msra.mxu0 %v1370_v12 }
 0x166   :  { %1442 = vmatprep.subr.mxu1 %v2393_v0  ;;  %1667 = vmatprep.subr.mxu0 %v2393_v0 }
 0x167   :  { %902 = vmatmul.mubr.f32.gmra.mxu1 %v2050_v15  ;;  %1159 = vmatmul.mubr.f32.gmra.mxu0 %v2050_v15 }
 0x168   :  { %907 = vmatprep.mubr.f32.mxu1 %v2048_v49  ;;  %1164 = vmatprep.mubr.f32.mxu0 %v2048_v49 }
 0x169   :  { %1443 = vmatpush2.msra.mxu1 %v1337_v18  ;;  %1668 = vmatpush2.msra.mxu0 %v1369_v52 }
 0x16a   :  { %1444 = vmatprep.subr.mxu1 %v2393_v0  ;;  %1669 = vmatprep.subr.mxu0 %v2393_v0 }
 0x16b   :  { %908 = vmatmul.mubr.f32.gmra.mxu1 %v2054_v19  ;;  %1165 = vmatmul.mubr.f32.gmra.mxu0 %v2054_v19 }
 0x16c   :  { %913 = vmatprep.mubr.f32.mxu1 %v2052_v16  ;;  %1170 = vmatprep.mubr.f32.mxu0 %v2052_v16 }
 0x16d   :  { %1445 = vmatpush2.msra.mxu1 %v1336_v48  ;;  %1670 = vmatpush2.msra.mxu0 %v1368_v20 }
 0x16e   :  { %1446 = vmatprep.subr.mxu1 %v2393_v0  ;;  %1671 = vmatprep.subr.mxu0 %v2393_v0 }
 0x16f   :  { %914 = vmatmul.mubr.f32.gmra.mxu1 %v2058_v54  ;;  %1171 = vmatmul.mubr.f32.gmra.mxu0 %v2058_v54 }
 0x170   :  { %919 = vmatprep.mubr.f32.mxu1 %v2056_v21  ;;  %1176 = vmatprep.mubr.f32.mxu0 %v2056_v21 }
 0x171   :  { %1447 = vmatpush2.msra.mxu1 %v1335_v23  ;;  %1672 = vmatpush2.msra.mxu0 %v1367_v17 }
 0x172   :  { %1448 = vmatprep.subr.mxu1 %v2393_v0  ;;  %1673 = vmatprep.subr.mxu0 %v2393_v0 }
 0x173   :  { %920 = vmatmul.mubr.f32.gmra.mxu1 %v2062_v24  ;;  %1177 = vmatmul.mubr.f32.gmra.mxu0 %v2062_v24 }
 0x174   :  { %925 = vmatprep.mubr.f32.mxu1 %v2060_v36  ;;  %1182 = vmatprep.mubr.f32.mxu0 %v2060_v36 }
 0x175   :  { %1449 = vmatpush2.msra.mxu1 %v1334_v27  ;;  %1674 = vmatpush2.msra.mxu0 %v1366_v28 }
 0x176   :  { %1450 = vmatprep.subr.mxu1 %v2393_v0  ;;  %1675 = vmatprep.subr.mxu0 %v2393_v0  ;;  %v2868_v0 = vrot.slane %v653_v3, %v103_v47 }
 0x177   :  { %926 = vmatmul.mubr.f32.gmra.mxu1 %v2064_v51  ;;  %1183 = vmatmul.mubr.f32.gmra.mxu0 %v2064_v51 }
 0x178   :  { %1451 = vmatpush2.msra.mxu1 %v1333_v29  ;;  %1676 = vmatpush2.msra.mxu0 %v1365_v60 }
 0x1bb   :  { %v741_v7 = vpop.f32.mrf.mxu1  ;;  %v998_v57 = vpop.f32.mrf.mxu0 }
 0x1bc   :  { %v742_v25 = vadd.f32 %v741_v7, %v2862_v33  ;;  %v999_v41 = vadd.f32 %v998_v57, %v2864_v34 }
 0x1bd   :  { %v743_v37 = vpop.f32.mrf.mxu1  ;;  %v1000_v39 = vpop.f32.mrf.mxu0 }
 0x1be   :  { %v744_v42 = vadd.f32 %v743_v37, %v2868_v0  ;;  %v1001_v45 = vadd.f32 %v1000_v39, %v2870_v35  ;;  %2065 = vtanh.f32 %v742_v25 }
 0x1bf   :  { %v747_v22 = vpop.f32.mrf.mxu1  ;;  %v1004_v38 = vpop.f32.mrf.mxu0 }
 0x1c0   :  { %2067 = vtanh.f32 %v744_v42  ;;  %v748_v44 = vadd.f32 %v747_v22, %v2862_v33  ;;  %v1005_v2 = vadd.f32 %v1004_v38, %v2864_v34 }
 0x1c1   :  { %2069 = vtanh.f32 %v1001_v45  ;;  %v749_v47 = vpop.f32.mrf.mxu1  ;;  %v1006_v43 = vpop.f32.mrf.mxu0 }
 0x1c2   :  { %2071 = vtanh.f32 %v999_v41  ;;  %v750_v46 = vadd.f32 %v749_v47, %v2868_v0  ;;  %v1007_v50 = vadd.f32 %v1006_v43, %v2870_v35 }
 0x1c3   :  { %2073 = vtanh.f32 %v748_v44  ;;  %v753_v53 = vpop.f32.mrf.mxu1  ;;  %v1010_v55 = vpop.f32.mrf.mxu0 }
 0x1c4   :  { %2075 = vtanh.f32 %v750_v46  ;;  %v754_v58 = vadd.f32 %v753_v53, %v2862_v33  ;;  %v1011_v59 = vadd.f32 %v1010_v55, %v2864_v34 }
 0x1c5   :  { %2077 = vtanh.f32 %v1007_v50  ;;  %v755_v40 = vpop.f32.mrf.mxu1  ;;  %v1012_v13 = vpop.f32.mrf.mxu0 }
 0x1c6   :  { %2079 = vtanh.f32 %v1005_v2  ;;  %v756_v61 = vadd.f32 %v755_v40, %v2868_v0  ;;  %v1013_v62 = vadd.f32 %v1012_v13, %v2870_v35 }
 0x1c7   :  { %2081 = vtanh.f32 %v754_v58  ;;  %v759_v63 = vpop.f32.mrf.mxu1  ;;  %v1016_v1 = vpop.f32.mrf.mxu0 }
 0x1c8   :  { %2083 = vtanh.f32 %v756_v61  ;;  %v760_v5 = vadd.f32 %v759_v63, %v2862_v33  ;;  %v1017_v6 = vadd.f32 %v1016_v1, %v2864_v34 }
 0x1c9   :  { %2085 = vtanh.f32 %v1013_v62  ;;  %v761_v31 = vpop.f32.mrf.mxu1  ;;  %v1018_v4 = vpop.f32.mrf.mxu0 }
 0x1ca   :  { %2087 = vtanh.f32 %v1011_v59  ;;  %v762_v8 = vadd.f32 %v761_v31, %v2868_v0  ;;  %v1019_v9 = vadd.f32 %v1018_v4, %v2870_v35 }
 0x1cb   :  { %2089 = vtanh.f32 %v760_v5  ;;  %v765_v10 = vpop.f32.mrf.mxu1  ;;  %v1022_v26 = vpop.f32.mrf.mxu0 }
 0x1cc   :  { %v2066_v56 = vpop.eup %2065  ;;  %2091 = vtanh.f32 %v762_v8  ;;  %v766_v11 = vadd.f32 %v765_v10, %v2862_v33  ;;  %v1023_v18 = vadd.f32 %v1022_v26, %v2864_v34 }
 0x1cd   :  { %v2068_v12 = vpop.eup %2067  ;;  %2093 = vtanh.f32 %v1019_v9  ;;  %v767_v49 = vpop.f32.mrf.mxu1 }
 0x1ce   :  { %v1024_v14 = vpop.f32.mrf.mxu0  ;;  %v2070_v15 = vpop.eup %2069  ;;  %2095 = vtanh.f32 %v1017_v6  ;;  %v768_v52 = vadd.f32 %v767_v49, %v2868_v0  ;;  %1452 = vmatprep.mubr.f32.mxu1 %v2068_v12 }
 0x1cf   :  { %v1025_v16 = vadd.f32 %v1024_v14, %v2870_v35  ;;  %v2072_v19 = vpop.eup %2071  ;;  %2097 = vtanh.f32 %v766_v11  ;;  %1677 = vmatprep.mubr.f32.mxu0 %v2070_v15  ;;  %v771_v48 = vpop.f32.mrf.mxu1  ;;  %1453 = vmatmul.mubr.f32.vlgmr.msra.gmra.mxu1 %v2066_v56 }
 0x1d0   :  { %v1028_v20 = vpop.f32.mrf.mxu0  ;;  %v2074_v21 = vpop.eup %2073  ;;  %2099 = vtanh.f32 %v768_v52  ;;  %v772_v54 = vadd.f32 %v771_v48, %v2862_v33  ;;  %1678 = vmatmul.mubr.f32.vlgmr.msra.gmra.mxu0 %v2072_v19 }
 0x1d1   :  { %v2076_v23 = vpop.eup %2075  ;;  %2101 = vtanh.f32 %v1025_v16  ;;  %v773_v17 = vpop.f32.mrf.mxu1  ;;  %v1029_v27 = vadd.f32 %v1028_v20, %v2864_v34 }
 0x1d2   :  { %v1030_v36 = vpop.f32.mrf.mxu0  ;;  %v2078_v24 = vpop.eup %2077  ;;  %2103 = vtanh.f32 %v1023_v18  ;;  %v774_v28 = vadd.f32 %v773_v17, %v2868_v0  ;;  %1457 = vmatprep.mubr.f32.mxu1 %v2076_v23 }
 0x1d3   :  { %v1031_v29 = vadd.f32 %v1030_v36, %v2870_v35  ;;  %v2080_v60 = vpop.eup %2079  ;;  %2105 = vtanh.f32 %v772_v54  ;;  %1682 = vmatprep.mubr.f32.mxu0 %v2078_v24  ;;  %v777_v51 = vpop.f32.mrf.mxu1  ;;  %1458 = vmatmul.mubr.f32.gmra.mxu1 %v2074_v21 }
 0x1d4   :  { %v1034_v3 = vpop.f32.mrf.mxu0  ;;  %v2082_v30 = vpop.eup %2081  ;;  %2107 = vtanh.f32 %v774_v28  ;;  %v778_v32 = vadd.f32 %v777_v51, %v2862_v33  ;;  %1683 = vmatmul.mubr.f32.gmra.mxu0 %v2080_v60 }
 0x1d5   :  { %v2084_v7 = vpop.eup %2083  ;;  %2109 = vtanh.f32 %v1031_v29  ;;  %v779_v57 = vpop.f32.mrf.mxu1  ;;  %v1035_v39 = vadd.f32 %v1034_v3, %v2864_v34 }
 0x1d6   :  { %v1036_v25 = vpop.f32.mrf.mxu0  ;;  %v2086_v37 = vpop.eup %2085  ;;  %2111 = vtanh.f32 %v1029_v27  ;;  %v780_v41 = vadd.f32 %v779_v57, %v2868_v0  ;;  %1462 = vmatprep.mubr.f32.mxu1 %v2084_v7 }
 0x1d7   :  { %v1037_v42 = vadd.f32 %v1036_v25, %v2870_v35  ;;  %v2088_v45 = vpop.eup %2087  ;;  %2113 = vtanh.f32 %v778_v32  ;;  %1687 = vmatprep.mubr.f32.mxu0 %v2086_v37  ;;  %v783_v22 = vpop.f32.mrf.mxu1  ;;  %1463 = vmatmul.mubr.f32.gmra.mxu1 %v2082_v30 }
 0x1d8   :  { %v1040_v38 = vpop.f32.mrf.mxu0  ;;  %v2090_v44 = vpop.eup %2089  ;;  %2115 = vtanh.f32 %v780_v41  ;;  %v784_v47 = vadd.f32 %v783_v22, %v2862_v33  ;;  %1688 = vmatmul.mubr.f32.gmra.mxu0 %v2088_v45 }
 0x1d9   :  { %v2092_v43 = vpop.eup %2091  ;;  %2117 = vtanh.f32 %v1037_v42  ;;  %v785_v2 = vpop.f32.mrf.mxu1  ;;  %v1041_v53 = vadd.f32 %v1040_v38, %v2864_v34 }
 0x1da   :  { %v1042_v46 = vpop.f32.mrf.mxu0  ;;  %v2094_v50 = vpop.eup %2093  ;;  %2119 = vtanh.f32 %v1035_v39  ;;  %v786_v55 = vadd.f32 %v785_v2, %v2868_v0  ;;  %1467 = vmatprep.mubr.f32.mxu1 %v2092_v43 }
 0x1db   :  { %v1043_v58 = vadd.f32 %v1042_v46, %v2870_v35  ;;  %v2096_v40 = vpop.eup %2095  ;;  %2121 = vtanh.f32 %v784_v47  ;;  %1692 = vmatprep.mubr.f32.mxu0 %v2094_v50  ;;  %v789_v13 = vpop.f32.mrf.mxu1  ;;  %1468 = vmatmul.mubr.f32.gmra.mxu1 %v2090_v44 }
 0x1dc   :  { %v1046_v59 = vpop.f32.mrf.mxu0  ;;  %v2098_v61 = vpop.eup %2097  ;;  %2123 = vtanh.f32 %v786_v55  ;;  %v790_v62 = vadd.f32 %v789_v13, %v2862_v33  ;;  %1693 = vmatmul.mubr.f32.gmra.mxu0 %v2096_v40 }
 0x1dd   :  { %v2100_v63 = vpop.eup %2099  ;;  %2125 = vtanh.f32 %v1043_v58  ;;  %v791_v1 = vpop.f32.mrf.mxu1  ;;  %v1047_v4 = vadd.f32 %v1046_v59, %v2864_v34 }
 0x1de   :  { %v1048_v5 = vpop.f32.mrf.mxu0  ;;  %v2102_v31 = vpop.eup %2101  ;;  %2127 = vtanh.f32 %v1041_v53  ;;  %v792_v6 = vadd.f32 %v791_v1, %v2868_v0  ;;  %1472 = vmatprep.mubr.f32.mxu1 %v2100_v63 }
 0x1df   :  { %v1049_v8 = vadd.f32 %v1048_v5, %v2870_v35  ;;  %v2104_v9 = vpop.eup %2103  ;;  %2129 = vtanh.f32 %v790_v62  ;;  %1697 = vmatprep.mubr.f32.mxu0 %v2102_v31  ;;  %v795_v10 = vpop.f32.mrf.mxu1  ;;  %1473 = vmatmul.mubr.f32.gmra.mxu1 %v2098_v61 }
 0x1e0   :  { %v1052_v26 = vpop.f32.mrf.mxu0  ;;  %v2106_v56 = vpop.eup %2105  ;;  %2131 = vtanh.f32 %v792_v6  ;;  %v796_v11 = vadd.f32 %v795_v10, %v2862_v33  ;;  %1698 = vmatmul.mubr.f32.gmra.mxu0 %v2104_v9 }
 0x1e1   :  { %v2108_v12 = vpop.eup %2107  ;;  %2133 = vtanh.f32 %v1049_v8  ;;  %v797_v49 = vpop.f32.mrf.mxu1  ;;  %v1053_v18 = vadd.f32 %v1052_v26, %v2864_v34 }
 0x1e2   :  { %v1054_v14 = vpop.f32.mrf.mxu0  ;;  %v2110_v15 = vpop.eup %2109  ;;  %2135 = vtanh.f32 %v1047_v4  ;;  %v798_v52 = vadd.f32 %v797_v49, %v2868_v0  ;;  %1477 = vmatprep.mubr.f32.mxu1 %v2108_v12 }
 0x1e3   :  { %v1055_v16 = vadd.f32 %v1054_v14, %v2870_v35  ;;  %v2112_v19 = vpop.eup %2111  ;;  %2137 = vtanh.f32 %v796_v11  ;;  %1702 = vmatprep.mubr.f32.mxu0 %v2110_v15  ;;  %v801_v48 = vpop.f32.mrf.mxu1  ;;  %1478 = vmatmul.mubr.f32.gmra.mxu1 %v2106_v56 }
 0x1e4   :  { %v1058_v20 = vpop.f32.mrf.mxu0  ;;  %v2114_v21 = vpop.eup %2113  ;;  %2139 = vtanh.f32 %v798_v52  ;;  %v802_v54 = vadd.f32 %v801_v48, %v2862_v33  ;;  %1703 = vmatmul.mubr.f32.gmra.mxu0 %v2112_v19 }
 0x1e5   :  { %v2116_v23 = vpop.eup %2115  ;;  %2141 = vtanh.f32 %v1055_v16  ;;  %v803_v17 = vpop.f32.mrf.mxu1  ;;  %v1059_v27 = vadd.f32 %v1058_v20, %v2864_v34 }
 0x1e6   :  { %v1060_v36 = vpop.f32.mrf.mxu0  ;;  %v2118_v24 = vpop.eup %2117  ;;  %2143 = vtanh.f32 %v1053_v18  ;;  %v804_v28 = vadd.f32 %v803_v17, %v2868_v0  ;;  %1482 = vmatprep.mubr.f32.mxu1 %v2116_v23 }
 0x1e7   :  { %v1061_v29 = vadd.f32 %v1060_v36, %v2870_v35  ;;  %v2120_v60 = vpop.eup %2119  ;;  %2145 = vtanh.f32 %v802_v54  ;;  %1707 = vmatprep.mubr.f32.mxu0 %v2118_v24  ;;  %v807_v51 = vpop.f32.mrf.mxu1  ;;  %1483 = vmatmul.mubr.f32.gmra.mxu1 %v2114_v21 }
 0x1e8   :  { %v1064_v3 = vpop.f32.mrf.mxu0  ;;  %v2122_v30 = vpop.eup %2121  ;;  %2147 = vtanh.f32 %v804_v28  ;;  %v808_v32 = vadd.f32 %v807_v51, %v2862_v33  ;;  %1708 = vmatmul.mubr.f32.gmra.mxu0 %v2120_v60 }
 0x1e9   :  { %v2124_v7 = vpop.eup %2123  ;;  %2149 = vtanh.f32 %v1061_v29  ;;  %v809_v57 = vpop.f32.mrf.mxu1  ;;  %v1065_v39 = vadd.f32 %v1064_v3, %v2864_v34 }
 0x1ea   :  { %v1066_v25 = vpop.f32.mrf.mxu0  ;;  %v2126_v37 = vpop.eup %2125  ;;  %2151 = vtanh.f32 %v1059_v27  ;;  %v810_v41 = vadd.f32 %v809_v57, %v2868_v0  ;;  %1487 = vmatprep.mubr.f32.mxu1 %v2124_v7 }
 0x1eb   :  { %v1067_v42 = vadd.f32 %v1066_v25, %v2870_v35  ;;  %v2128_v45 = vpop.eup %2127  ;;  %2153 = vtanh.f32 %v808_v32  ;;  %1712 = vmatprep.mubr.f32.mxu0 %v2126_v37  ;;  %v813_v22 = vpop.f32.mrf.mxu1  ;;  %1488 = vmatmul.mubr.f32.gmra.mxu1 %v2122_v30 }
 0x1ec   :  { %v1070_v38 = vpop.f32.mrf.mxu0  ;;  %v2130_v44 = vpop.eup %2129  ;;  %2155 = vtanh.f32 %v810_v41  ;;  %v814_v47 = vadd.f32 %v813_v22, %v2862_v33  ;;  %1713 = vmatmul.mubr.f32.gmra.mxu0 %v2128_v45 }
 0x1ed   :  { %v2132_v43 = vpop.eup %2131  ;;  %2157 = vtanh.f32 %v1067_v42  ;;  %v815_v2 = vpop.f32.mrf.mxu1  ;;  %v1071_v53 = vadd.f32 %v1070_v38, %v2864_v34 }
 0x1ee   :  { %v1072_v46 = vpop.f32.mrf.mxu0  ;;  %v2134_v50 = vpop.eup %2133  ;;  %2159 = vtanh.f32 %v1065_v39  ;;  %v816_v55 = vadd.f32 %v815_v2, %v2868_v0  ;;  %1492 = vmatprep.mubr.f32.mxu1 %v2132_v43 }
 0x1ef   :  { %v1073_v58 = vadd.f32 %v1072_v46, %v2870_v35  ;;  %v2136_v40 = vpop.eup %2135  ;;  %2161 = vtanh.f32 %v814_v47  ;;  %1717 = vmatprep.mubr.f32.mxu0 %v2134_v50  ;;  %v819_v13 = vpop.f32.mrf.mxu1  ;;  %1493 = vmatmul.mubr.f32.gmra.mxu1 %v2130_v44 }
 0x1f0   :  { %v1076_v59 = vpop.f32.mrf.mxu0  ;;  %v2138_v61 = vpop.eup %2137  ;;  %2163 = vtanh.f32 %v816_v55  ;;  %v820_v62 = vadd.f32 %v819_v13, %v2862_v33  ;;  %1718 = vmatmul.mubr.f32.gmra.mxu0 %v2136_v40 }
 0x1f1   :  { %v2140_v63 = vpop.eup %2139  ;;  %2165 = vtanh.f32 %v1073_v58  ;;  %v821_v1 = vpop.f32.mrf.mxu1  ;;  %v1077_v4 = vadd.f32 %v1076_v59, %v2864_v34 }
 0x1f2   :  { %v1078_v5 = vpop.f32.mrf.mxu0  ;;  %v2142_v31 = vpop.eup %2141  ;;  %2167 = vtanh.f32 %v1071_v53  ;;  %v822_v6 = vadd.f32 %v821_v1, %v2868_v0  ;;  %1497 = vmatprep.mubr.f32.mxu1 %v2140_v63 }
 0x1f3   :  { %v1079_v8 = vadd.f32 %v1078_v5, %v2870_v35  ;;  %v2144_v9 = vpop.eup %2143  ;;  %2169 = vtanh.f32 %v820_v62  ;;  %1722 = vmatprep.mubr.f32.mxu0 %v2142_v31  ;;  %v825_v10 = vpop.f32.mrf.mxu1  ;;  %1498 = vmatmul.mubr.f32.gmra.mxu1 %v2138_v61 }
 0x1f4   :  { %v1082_v26 = vpop.f32.mrf.mxu0  ;;  %v2146_v56 = vpop.eup %2145  ;;  %2171 = vtanh.f32 %v822_v6  ;;  %v826_v11 = vadd.f32 %v825_v10, %v2862_v33  ;;  %1723 = vmatmul.mubr.f32.gmra.mxu0 %v2144_v9 }
 0x1f5   :  { %v2148_v12 = vpop.eup %2147  ;;  %2173 = vtanh.f32 %v1079_v8  ;;  %v827_v49 = vpop.f32.mrf.mxu1  ;;  %v1083_v18 = vadd.f32 %v1082_v26, %v2864_v34 }
 0x1f6   :  { %v1084_v14 = vpop.f32.mrf.mxu0  ;;  %v2150_v15 = vpop.eup %2149  ;;  %2175 = vtanh.f32 %v1077_v4  ;;  %v828_v52 = vadd.f32 %v827_v49, %v2868_v0  ;;  %1502 = vmatprep.mubr.f32.mxu1 %v2148_v12 }
 0x1f7   :  { %v1085_v16 = vadd.f32 %v1084_v14, %v2870_v35  ;;  %v2152_v19 = vpop.eup %2151  ;;  %2177 = vtanh.f32 %v826_v11  ;;  %1727 = vmatprep.mubr.f32.mxu0 %v2150_v15  ;;  %v831_v48 = vpop.f32.mrf.mxu1  ;;  %1503 = vmatmul.mubr.f32.gmra.mxu1 %v2146_v56 }
 0x1f8   :  { %v1088_v20 = vpop.f32.mrf.mxu0  ;;  %v2154_v21 = vpop.eup %2153  ;;  %2179 = vtanh.f32 %v828_v52  ;;  %v832_v54 = vadd.f32 %v831_v48, %v2862_v33  ;;  %1728 = vmatmul.mubr.f32.gmra.mxu0 %v2152_v19 }
 0x1f9   :  { %v2156_v23 = vpop.eup %2155  ;;  %2181 = vtanh.f32 %v1085_v16  ;;  %v833_v17 = vpop.f32.mrf.mxu1  ;;  %v1089_v27 = vadd.f32 %v1088_v20, %v2864_v34 }
 0x1fa   :  { %v1090_v36 = vpop.f32.mrf.mxu0  ;;  %v2158_v24 = vpop.eup %2157  ;;  %2183 = vtanh.f32 %v1083_v18  ;;  %v834_v28 = vadd.f32 %v833_v17, %v2868_v0  ;;  %1507 = vmatprep.mubr.f32.mxu1 %v2156_v23 }
 0x1fb   :  { %v1091_v29 = vadd.f32 %v1090_v36, %v2870_v35  ;;  %v2160_v60 = vpop.eup %2159  ;;  %2185 = vtanh.f32 %v832_v54  ;;  %1732 = vmatprep.mubr.f32.mxu0 %v2158_v24  ;;  %v837_v51 = vpop.f32.mrf.mxu1  ;;  %1508 = vmatmul.mubr.f32.gmra.mxu1 %v2154_v21 }
 0x1fc   :  { %v1094_v3 = vpop.f32.mrf.mxu0  ;;  %v2162_v30 = vpop.eup %2161  ;;  %2187 = vtanh.f32 %v834_v28  ;;  %v838_v32 = vadd.f32 %v837_v51, %v2862_v33  ;;  %1733 = vmatmul.mubr.f32.gmra.mxu0 %v2160_v60 }
 0x1fd   :  { %v2164_v7 = vpop.eup %2163  ;;  %2189 = vtanh.f32 %v1091_v29  ;;  %v839_v57 = vpop.f32.mrf.mxu1  ;;  %v1095_v39 = vadd.f32 %v1094_v3, %v2864_v34 }
 0x1fe   :  { %v1096_v25 = vpop.f32.mrf.mxu0  ;;  %v2166_v37 = vpop.eup %2165  ;;  %2191 = vtanh.f32 %v1089_v27  ;;  %v840_v41 = vadd.f32 %v839_v57, %v2868_v0  ;;  %1512 = vmatprep.mubr.f32.mxu1 %v2164_v7 }
 0x1ff   :  { %v1097_v42 = vadd.f32 %v1096_v25, %v2870_v35  ;;  %v2168_v45 = vpop.eup %2167  ;;  %2193 = vtanh.f32 %v838_v32  ;;  %1737 = vmatprep.mubr.f32.mxu0 %v2166_v37  ;;  %v843_v22 = vpop.f32.mrf.mxu1  ;;  %1513 = vmatmul.mubr.f32.gmra.mxu1 %v2162_v30 }
 0x200   :  { %v1100_v38 = vpop.f32.mrf.mxu0  ;;  %v2170_v44 = vpop.eup %2169  ;;  %2195 = vtanh.f32 %v840_v41  ;;  %v844_v47 = vadd.f32 %v843_v22, %v2862_v33  ;;  %1738 = vmatmul.mubr.f32.gmra.mxu0 %v2168_v45 }
 0x201   :  { %v2172_v43 = vpop.eup %2171  ;;  %2197 = vtanh.f32 %v1097_v42  ;;  %v845_v2 = vpop.f32.mrf.mxu1  ;;  %v1101_v53 = vadd.f32 %v1100_v38, %v2864_v34 }
 0x202   :  { %v1102_v46 = vpop.f32.mrf.mxu0  ;;  %v2174_v50 = vpop.eup %2173  ;;  %2199 = vtanh.f32 %v1095_v39  ;;  %v846_v55 = vadd.f32 %v845_v2, %v2868_v0  ;;  %1517 = vmatprep.mubr.f32.mxu1 %v2172_v43 }
 0x203   :  { %v1103_v58 = vadd.f32 %v1102_v46, %v2870_v35  ;;  %v2176_v40 = vpop.eup %2175  ;;  %2201 = vtanh.f32 %v844_v47  ;;  %1742 = vmatprep.mubr.f32.mxu0 %v2174_v50  ;;  %v849_v13 = vpop.f32.mrf.mxu1  ;;  %1518 = vmatmul.mubr.f32.gmra.mxu1 %v2170_v44 }
 0x204   :  { %v1106_v59 = vpop.f32.mrf.mxu0  ;;  %v2178_v61 = vpop.eup %2177  ;;  %2203 = vtanh.f32 %v846_v55  ;;  %v850_v62 = vadd.f32 %v849_v13, %v2862_v33  ;;  %1743 = vmatmul.mubr.f32.gmra.mxu0 %v2176_v40 }
 0x205   :  { %v2180_v63 = vpop.eup %2179  ;;  %2205 = vtanh.f32 %v1103_v58  ;;  %v851_v1 = vpop.f32.mrf.mxu1  ;;  %v1107_v4 = vadd.f32 %v1106_v59, %v2864_v34 }
 0x206   :  { %v1108_v5 = vpop.f32.mrf.mxu0  ;;  %v2182_v31 = vpop.eup %2181  ;;  %2207 = vtanh.f32 %v1101_v53  ;;  %v852_v6 = vadd.f32 %v851_v1, %v2868_v0  ;;  %1522 = vmatprep.mubr.f32.mxu1 %v2180_v63 }
 0x207   :  { %v1109_v8 = vadd.f32 %v1108_v5, %v2870_v35  ;;  %v2184_v9 = vpop.eup %2183  ;;  %2209 = vtanh.f32 %v850_v62  ;;  %1747 = vmatprep.mubr.f32.mxu0 %v2182_v31  ;;  %v855_v10 = vpop.f32.mrf.mxu1  ;;  %1523 = vmatmul.mubr.f32.gmra.mxu1 %v2178_v61 }
 0x208   :  { %v1112_v26 = vpop.f32.mrf.mxu0  ;;  %v2186_v56 = vpop.eup %2185  ;;  %2211 = vtanh.f32 %v852_v6  ;;  %v856_v11 = vadd.f32 %v855_v10, %v2862_v33  ;;  %1748 = vmatmul.mubr.f32.gmra.mxu0 %v2184_v9 }
 0x209   :  { %v2188_v12 = vpop.eup %2187  ;;  %2213 = vtanh.f32 %v1109_v8  ;;  %v857_v49 = vpop.f32.mrf.mxu1  ;;  %v1113_v18 = vadd.f32 %v1112_v26, %v2864_v34 }
 0x20a   :  { %v1114_v14 = vpop.f32.mrf.mxu0  ;;  %v2190_v15 = vpop.eup %2189  ;;  %2215 = vtanh.f32 %v1107_v4  ;;  %v858_v52 = vadd.f32 %v857_v49, %v2868_v0  ;;  %1527 = vmatprep.mubr.f32.mxu1 %v2188_v12 }
 0x20b   :  { %v1115_v16 = vadd.f32 %v1114_v14, %v2870_v35  ;;  %v2192_v19 = vpop.eup %2191  ;;  %2217 = vtanh.f32 %v856_v11  ;;  %1752 = vmatprep.mubr.f32.mxu0 %v2190_v15  ;;  %v861_v48 = vpop.f32.mrf.mxu1  ;;  %1528 = vmatmul.mubr.f32.gmra.mxu1 %v2186_v56 }
 0x20c   :  { %v1118_v20 = vpop.f32.mrf.mxu0  ;;  %v2194_v21 = vpop.eup %2193  ;;  %2219 = vtanh.f32 %v858_v52  ;;  %v862_v54 = vadd.f32 %v861_v48, %v2862_v33  ;;  %1753 = vmatmul.mubr.f32.gmra.mxu0 %v2192_v19 }
 0x20d   :  { %v2196_v23 = vpop.eup %2195  ;;  %2221 = vtanh.f32 %v1115_v16  ;;  %v863_v17 = vpop.f32.mrf.mxu1  ;;  %v1119_v27 = vadd.f32 %v1118_v20, %v2864_v34 }
 0x20e   :  { %v1120_v36 = vpop.f32.mrf.mxu0  ;;  %v2198_v24 = vpop.eup %2197  ;;  %2223 = vtanh.f32 %v1113_v18  ;;  %v864_v28 = vadd.f32 %v863_v17, %v2868_v0  ;;  %1532 = vmatprep.mubr.f32.mxu1 %v2196_v23 }
 0x20f   :  { %v1121_v29 = vadd.f32 %v1120_v36, %v2870_v35  ;;  %v2200_v60 = vpop.eup %2199  ;;  %2225 = vtanh.f32 %v862_v54  ;;  %1757 = vmatprep.mubr.f32.mxu0 %v2198_v24  ;;  %v867_v51 = vpop.f32.mrf.mxu1  ;;  %1533 = vmatmul.mubr.f32.gmra.mxu1 %v2194_v21 }
 0x210   :  { %v1124_v3 = vpop.f32.mrf.mxu0  ;;  %v2202_v30 = vpop.eup %2201  ;;  %2227 = vtanh.f32 %v864_v28  ;;  %v868_v32 = vadd.f32 %v867_v51, %v2862_v33  ;;  %1758 = vmatmul.mubr.f32.gmra.mxu0 %v2200_v60 }
 0x211   :  { %v2204_v7 = vpop.eup %2203  ;;  %2229 = vtanh.f32 %v1121_v29  ;;  %v869_v57 = vpop.f32.mrf.mxu1  ;;  %v1125_v39 = vadd.f32 %v1124_v3, %v2864_v34 }
 0x212   :  { %v1126_v25 = vpop.f32.mrf.mxu0  ;;  %v2206_v37 = vpop.eup %2205  ;;  %2231 = vtanh.f32 %v1119_v27  ;;  %v870_v41 = vadd.f32 %v869_v57, %v2868_v0  ;;  %1537 = vmatprep.mubr.f32.mxu1 %v2204_v7 }
 0x213   :  { %v1127_v42 = vadd.f32 %v1126_v25, %v2870_v35  ;;  %v2208_v45 = vpop.eup %2207  ;;  %2233 = vtanh.f32 %v868_v32  ;;  %1762 = vmatprep.mubr.f32.mxu0 %v2206_v37  ;;  %v873_v22 = vpop.f32.mrf.mxu1  ;;  %1538 = vmatmul.mubr.f32.gmra.mxu1 %v2202_v30 }
 0x214   :  { %v1130_v38 = vpop.f32.mrf.mxu0  ;;  %v2210_v44 = vpop.eup %2209  ;;  %2235 = vtanh.f32 %v870_v41  ;;  %v874_v47 = vadd.f32 %v873_v22, %v2862_v33  ;;  %1763 = vmatmul.mubr.f32.gmra.mxu0 %v2208_v45 }
 0x215   :  { %v2212_v43 = vpop.eup %2211  ;;  %2237 = vtanh.f32 %v1127_v42  ;;  %v875_v2 = vpop.f32.mrf.mxu1  ;;  %v1131_v53 = vadd.f32 %v1130_v38, %v2864_v34 }
 0x216   :  { %v1132_v46 = vpop.f32.mrf.mxu0  ;;  %v2214_v50 = vpop.eup %2213  ;;  %2239 = vtanh.f32 %v1125_v39  ;;  %v876_v55 = vadd.f32 %v875_v2, %v2868_v0  ;;  %1542 = vmatprep.mubr.f32.mxu1 %v2212_v43 }
 0x217   :  { %v1133_v58 = vadd.f32 %v1132_v46, %v2870_v35  ;;  %v2216_v40 = vpop.eup %2215  ;;  %2241 = vtanh.f32 %v874_v47  ;;  %1767 = vmatprep.mubr.f32.mxu0 %v2214_v50  ;;  %v879_v13 = vpop.f32.mrf.mxu1  ;;  %1543 = vmatmul.mubr.f32.gmra.mxu1 %v2210_v44 }
 0x218   :  { %v1136_v59 = vpop.f32.mrf.mxu0  ;;  %v2218_v61 = vpop.eup %2217  ;;  %2243 = vtanh.f32 %v876_v55  ;;  %v880_v62 = vadd.f32 %v879_v13, %v2862_v33  ;;  %1768 = vmatmul.mubr.f32.gmra.mxu0 %v2216_v40 }
 0x219   :  { %v2220_v63 = vpop.eup %2219  ;;  %2245 = vtanh.f32 %v1133_v58  ;;  %v881_v1 = vpop.f32.mrf.mxu1  ;;  %v1137_v4 = vadd.f32 %v1136_v59, %v2864_v34 }
 0x21a   :  { %v1138_v5 = vpop.f32.mrf.mxu0  ;;  %v2222_v31 = vpop.eup %2221  ;;  %2247 = vtanh.f32 %v1131_v53  ;;  %v882_v6 = vadd.f32 %v881_v1, %v2868_v0  ;;  %1547 = vmatprep.mubr.f32.mxu1 %v2220_v63 }
 0x21b   :  { %v1139_v8 = vadd.f32 %v1138_v5, %v2870_v35  ;;  %v2224_v9 = vpop.eup %2223  ;;  %2249 = vtanh.f32 %v880_v62  ;;  %1772 = vmatprep.mubr.f32.mxu0 %v2222_v31  ;;  %v885_v10 = vpop.f32.mrf.mxu1  ;;  %1548 = vmatmul.mubr.f32.gmra.mxu1 %v2218_v61 }
 0x21c   :  { %v1142_v26 = vpop.f32.mrf.mxu0  ;;  %v2226_v56 = vpop.eup %2225  ;;  %2251 = vtanh.f32 %v882_v6  ;;  %v886_v11 = vadd.f32 %v885_v10, %v2862_v33  ;;  %1773 = vmatmul.mubr.f32.gmra.mxu0 %v2224_v9 }
 0x21d   :  { %v2228_v12 = vpop.eup %2227  ;;  %2253 = vtanh.f32 %v1139_v8  ;;  %v887_v49 = vpop.f32.mrf.mxu1  ;;  %v1143_v18 = vadd.f32 %v1142_v26, %v2864_v34 }
 0x21e   :  { %v1144_v14 = vpop.f32.mrf.mxu0  ;;  %v2230_v15 = vpop.eup %2229  ;;  %2255 = vtanh.f32 %v1137_v4  ;;  %v888_v52 = vadd.f32 %v887_v49, %v2868_v0  ;;  %1552 = vmatprep.mubr.f32.mxu1 %v2228_v12 }
 0x21f   :  { %v1145_v16 = vadd.f32 %v1144_v14, %v2870_v35  ;;  %v2232_v19 = vpop.eup %2231  ;;  %2257 = vtanh.f32 %v886_v11  ;;  %1777 = vmatprep.mubr.f32.mxu0 %v2230_v15  ;;  %v891_v48 = vpop.f32.mrf.mxu1  ;;  %1553 = vmatmul.mubr.f32.gmra.mxu1 %v2226_v56 }
 0x220   :  { %v1148_v20 = vpop.f32.mrf.mxu0  ;;  %v2234_v21 = vpop.eup %2233  ;;  %2259 = vtanh.f32 %v888_v52  ;;  %v892_v54 = vadd.f32 %v891_v48, %v2862_v33  ;;  %1778 = vmatmul.mubr.f32.gmra.mxu0 %v2232_v19 }
 0x221   :  { %v2236_v23 = vpop.eup %2235  ;;  %2261 = vtanh.f32 %v1145_v16  ;;  %v893_v17 = vpop.f32.mrf.mxu1  ;;  %v1149_v27 = vadd.f32 %v1148_v20, %v2864_v34 }
 0x222   :  { %v1150_v36 = vpop.f32.mrf.mxu0  ;;  %v2238_v24 = vpop.eup %2237  ;;  %2263 = vtanh.f32 %v1143_v18  ;;  %v894_v28 = vadd.f32 %v893_v17, %v2868_v0  ;;  %1557 = vmatprep.mubr.f32.mxu1 %v2236_v23 }
 0x223   :  { %v1151_v29 = vadd.f32 %v1150_v36, %v2870_v35  ;;  %v2240_v60 = vpop.eup %2239  ;;  %2265 = vtanh.f32 %v892_v54  ;;  %1782 = vmatprep.mubr.f32.mxu0 %v2238_v24  ;;  %v897_v51 = vpop.f32.mrf.mxu1  ;;  %1558 = vmatmul.mubr.f32.gmra.mxu1 %v2234_v21 }
 0x224   :  { %v1154_v3 = vpop.f32.mrf.mxu0  ;;  %v2242_v30 = vpop.eup %2241  ;;  %2267 = vtanh.f32 %v894_v28  ;;  %v898_v32 = vadd.f32 %v897_v51, %v2862_v33  ;;  %1783 = vmatmul.mubr.f32.gmra.mxu0 %v2240_v60 }
 0x225   :  { %v2244_v7 = vpop.eup %2243  ;;  %2269 = vtanh.f32 %v1151_v29  ;;  %v899_v57 = vpop.f32.mrf.mxu1  ;;  %v1155_v39 = vadd.f32 %v1154_v3, %v2864_v34 }
 0x226   :  { %v1156_v25 = vpop.f32.mrf.mxu0  ;;  %v2246_v37 = vpop.eup %2245  ;;  %2271 = vtanh.f32 %v1149_v27  ;;  %v900_v41 = vadd.f32 %v899_v57, %v2868_v0  ;;  %1562 = vmatprep.mubr.f32.mxu1 %v2244_v7 }
 0x227   :  { %v1157_v42 = vadd.f32 %v1156_v25, %v2870_v35  ;;  %v2248_v45 = vpop.eup %2247  ;;  %2273 = vtanh.f32 %v898_v32  ;;  %1787 = vmatprep.mubr.f32.mxu0 %v2246_v37  ;;  %v903_v22 = vpop.f32.mrf.mxu1  ;;  %1563 = vmatmul.mubr.f32.gmra.mxu1 %v2242_v30 }
 0x228   :  { %v1160_v38 = vpop.f32.mrf.mxu0  ;;  %v2250_v44 = vpop.eup %2249  ;;  %2275 = vtanh.f32 %v900_v41  ;;  %v904_v47 = vadd.f32 %v903_v22, %v2862_v33  ;;  %1788 = vmatmul.mubr.f32.gmra.mxu0 %v2248_v45 }
 0x229   :  { %v2252_v43 = vpop.eup %2251  ;;  %2277 = vtanh.f32 %v1157_v42  ;;  %v905_v2 = vpop.f32.mrf.mxu1  ;;  %v1161_v53 = vadd.f32 %v1160_v38, %v2864_v34 }
 0x22a   :  { %v1162_v46 = vpop.f32.mrf.mxu0  ;;  %v2254_v50 = vpop.eup %2253  ;;  %2279 = vtanh.f32 %v1155_v39  ;;  %v906_v55 = vadd.f32 %v905_v2, %v2868_v0  ;;  %1567 = vmatprep.mubr.f32.mxu1 %v2252_v43 }
 0x22b   :  { %v1163_v58 = vadd.f32 %v1162_v46, %v2870_v35  ;;  %v2256_v40 = vpop.eup %2255  ;;  %2281 = vtanh.f32 %v904_v47  ;;  %1792 = vmatprep.mubr.f32.mxu0 %v2254_v50  ;;  %v909_v13 = vpop.f32.mrf.mxu1  ;;  %1568 = vmatmul.mubr.f32.gmra.mxu1 %v2250_v44 }
 0x22c   :  { %v1166_v59 = vpop.f32.mrf.mxu0  ;;  %v2258_v61 = vpop.eup %2257  ;;  %2283 = vtanh.f32 %v906_v55  ;;  %v910_v62 = vadd.f32 %v909_v13, %v2862_v33  ;;  %1793 = vmatmul.mubr.f32.gmra.mxu0 %v2256_v40  ;;  %v3003_v13 = vld [vmem:[%s3049_s6] ss:$0 sm:$0xff]  ;;  %s2394_s6 = smov [#allocation7]  }
 0x22d   :  { %v2260_v63 = vpop.eup %2259  ;;  %2285 = vtanh.f32 %v1163_v58  ;;  %v911_v1 = vpop.f32.mrf.mxu1  ;;  %v1167_v4 = vadd.f32 %v1166_v59, %v2864_v34  ;;  %s1875_s24 = sshll.u32 %s2394_s6, 4  ;;  %s1876_s24 = int_to_ptr.vmem [resolvable:$true] %s1875_s24 }
 0x22e   :  { %v1168_v5 = vpop.f32.mrf.mxu0  ;;  %v2262_v31 = vpop.eup %2261  ;;  %2287 = vtanh.f32 %v1161_v53  ;;  %v912_v6 = vadd.f32 %v911_v1, %v2868_v0  ;;  %1572 = vmatprep.mubr.f32.mxu1 %v2260_v63  ;;  %s2361_s25 = scalar_lea.vmem %s1876_s24, 4096  ;;  %p2366_p11 = scmp.lt.s32.totalorder %s1876_s24, %s1876_s24 }
 0x22f   :  { %v1169_v8 = vadd.f32 %v1168_v5, %v2870_v35  ;;  %v2264_v9 = vpop.eup %2263  ;;  %2289 = vtanh.f32 %v910_v62  ;;  %1797 = vmatprep.mubr.f32.mxu0 %v2262_v31  ;;  %v915_v10 = vpop.f32.mrf.mxu1  ;;  %1573 = vmatmul.mubr.f32.gmra.mxu1 %v2258_v61  ;;  %p2362_p10 = scmp.ne.s32.totalorder %s1876_s24, %s2361_s25  ;;  %p2367_p12 = scmp.lt.s32.totalorder %s2361_s25, %s2361_s25 }
 0x230   :  { %v1172_v26 = vpop.f32.mrf.mxu0  ;;  %v2266_v56 = vpop.eup %2265  ;;  %2291 = vtanh.f32 %v912_v6  ;;  %v916_v11 = vadd.f32 %v915_v10, %v2862_v33  ;;  %1798 = vmatmul.mubr.f32.gmra.mxu0 %v2264_v9 }
 0x231   :  { %v2268_v12 = vpop.eup %2267  ;;  %2293 = vtanh.f32 %v1169_v8  ;;  %v917_v49 = vpop.f32.mrf.mxu1  ;;  %v1173_v18 = vadd.f32 %v1172_v26, %v2864_v34  ;;  %p2368_p13 = por %p2367_p12, %p2366_p11 }
 0x232   :  { %v1174_v14 = vpop.f32.mrf.mxu0  ;;  %v2270_v15 = vpop.eup %2269  ;;  %2295 = vtanh.f32 %v1167_v4  ;;  %v918_v52 = vadd.f32 %v917_v49, %v2868_v0  ;;  %1577 = vmatprep.mubr.f32.mxu1 %v2268_v12 }
 0x233   :  { %v1175_v16 = vadd.f32 %v1174_v14, %v2870_v35  ;;  %v2272_v19 = vpop.eup %2271  ;;  %2297 = vtanh.f32 %v916_v11  ;;  %1802 = vmatprep.mubr.f32.mxu0 %v2270_v15  ;;  %v921_v48 = vpop.f32.mrf.mxu1  ;;  %1578 = vmatmul.mubr.f32.gmra.mxu1 %v2266_v56  ;;  %p2369_p0 = pnand %p2368_p13, %p2362_p10 }
 0x234   :  { %v1178_v20 = vpop.f32.mrf.mxu0  ;;  %v2274_v21 = vpop.eup %2273  ;;  %2299 = vtanh.f32 %v918_v52  ;;  %v922_v54 = vadd.f32 %v921_v48, %v2862_v33  ;;  %1803 = vmatmul.mubr.f32.gmra.mxu0 %v2272_v19 }
 0x235   :  { %v2276_v23 = vpop.eup %2275  ;;  %2301 = vtanh.f32 %v1175_v16  ;;  %v923_v17 = vpop.f32.mrf.mxu1  ;;  %v1179_v27 = vadd.f32 %v1178_v20, %v2864_v34 }
 0x236   :  { %v1180_v36 = vpop.f32.mrf.mxu0  ;;  %v2278_v24 = vpop.eup %2277  ;;  %2303 = vtanh.f32 %v1173_v18  ;;  %v924_v28 = vadd.f32 %v923_v17, %v2868_v0  ;;  %1582 = vmatprep.mubr.f32.mxu1 %v2276_v23 }
 0x237   :  { %v1181_v29 = vadd.f32 %v1180_v36, %v2870_v35  ;;  %v2280_v60 = vpop.eup %2279  ;;  %2305 = vtanh.f32 %v922_v54  ;;  %1807 = vmatprep.mubr.f32.mxu0 %v2278_v24  ;;  %v927_v51 = vpop.f32.mrf.mxu1  ;;  %1583 = vmatmul.mubr.f32.gmra.mxu1 %v2274_v21 }
 0x238   :  { %v1184_v3 = vpop.f32.mrf.mxu0  ;;  %v2282_v30 = vpop.eup %2281  ;;  %2307 = vtanh.f32 %v924_v28  ;;  %v928_v32 = vadd.f32 %v927_v51, %v2862_v33  ;;  %1808 = vmatmul.mubr.f32.gmra.mxu0 %v2280_v60 }
 0x239   :  { %v2284_v7 = vpop.eup %2283  ;;  %2309 = vtanh.f32 %v1181_v29  ;;  %v929_v57 = vpop.f32.mrf.mxu1  ;;  %v1185_v39 = vadd.f32 %v1184_v3, %v2864_v34 }
 0x23a   :  { %v1186_v25 = vpop.f32.mrf.mxu0  ;;  %v2286_v37 = vpop.eup %2285  ;;  %2311 = vtanh.f32 %v1179_v27  ;;  %v930_v41 = vadd.f32 %v929_v57, %v2868_v0  ;;  %1587 = vmatprep.mubr.f32.mxu1 %v2284_v7 }
 0x23b   :  { %v1187_v42 = vadd.f32 %v1186_v25, %v2870_v35  ;;  %v2288_v45 = vpop.eup %2287  ;;  %2313 = vtanh.f32 %v928_v32  ;;  %1812 = vmatprep.mubr.f32.mxu0 %v2286_v37  ;;  %1588 = vmatmul.mubr.f32.gmra.mxu1 %v2282_v30 }
 0x23c   :  { %v2290_v22 = vpop.eup %2289  ;;  %2315 = vtanh.f32 %v930_v41  ;;  %1813 = vmatmul.mubr.f32.gmra.mxu0 %v2288_v45 }
 0x23d   :  { %v2292_v33 = vpop.eup %2291  ;;  %2317 = vtanh.f32 %v1187_v42 }
 0x23e   :  { %v2294_v38 = vpop.eup %2293  ;;  %2319 = vtanh.f32 %v1185_v39  ;;  %1592 = vmatprep.mubr.f32.mxu1 %v2292_v33 }
 0x23f   :  { %v2296_v44 = vpop.eup %2295  ;;  %1817 = vmatprep.mubr.f32.mxu0 %v2294_v38  ;;  %1593 = vmatmul.mubr.f32.gmra.mxu1 %v2290_v22 }
 0x240   :  { %v2298_v34 = vpop.eup %2297  ;;  %1818 = vmatmul.mubr.f32.gmra.mxu0 %v2296_v44 }
 0x241   :  { %v2300_v0 = vpop.eup %2299 }
 0x242   :  { %v2302_v35 = vpop.eup %2301  ;;  %1597 = vmatprep.mubr.f32.mxu1 %v2300_v0 }
 0x243   :  { %v2304_v47 = vpop.eup %2303  ;;  %1822 = vmatprep.mubr.f32.mxu0 %v2302_v35  ;;  %1598 = vmatmul.mubr.f32.gmra.mxu1 %v2298_v34 }
 0x244   :  { %v2306_v43 = vpop.eup %2305  ;;  %1823 = vmatmul.mubr.f32.gmra.mxu0 %v2304_v47 }
 0x245   :  { %v2308_v2 = vpop.eup %2307 }
 0x246   :  { %v2310_v46 = vpop.eup %2309  ;;  %1602 = vmatprep.mubr.f32.mxu1 %v2308_v2 }
 0x247   :  { %v2312_v50 = vpop.eup %2311  ;;  %1827 = vmatprep.mubr.f32.mxu0 %v2310_v46  ;;  %1603 = vmatmul.mubr.f32.gmra.mxu1 %v2306_v43 }
 0x248   :  { %v2314_v53 = vpop.eup %2313  ;;  %1828 = vmatmul.mubr.f32.gmra.mxu0 %v2312_v50 }
 0x249   :  { %v2316_v55 = vpop.eup %2315 }
 0x24a   :  { %v2318_v58 = vpop.eup %2317  ;;  %1607 = vmatprep.mubr.f32.mxu1 %v2316_v55 }
 0x24b   :  { %v2320_v40 = vpop.eup %2319  ;;  %1832 = vmatprep.mubr.f32.mxu0 %v2318_v58  ;;  %1608 = vmatmul.mubr.f32.gmra.mxu1 %v2314_v53 }
 0x24c   :  { %1833 = vmatmul.mubr.f32.gmra.mxu0 %v2320_v40 }
 0x28f   :  { %v1454_v59 = vpop.f32.mrf.mxu1 }
 0x290   :  { %v1455_v61 = vadd.f32 %v3003_v13, %v1454_v59  ;;  %v1679_v62 = vpop.f32.mrf.mxu0 }
 0x291   :  { %v1456_v63 = vpop.f32.mrf.mxu1 }
 0x292   :  { %v1680_v1 = vadd.f32 %v1679_v62, %v1455_v61  ;;  %v1681_v5 = vpop.f32.mrf.mxu0 }
 0x293   :  { %v1459_v31 = vpop.f32.mrf.mxu1 }
 0x294   :  { %1838 = vst [vmem:[#allocation7] sm:$0xff] %v1680_v1  ;;  %v1460_v4 = vadd.f32 %v3003_v13, %v1459_v31  ;;  %v1684_v6 = vpop.f32.mrf.mxu0 }
 0x295   :  { %v1461_v8 = vpop.f32.mrf.mxu1 }
 0x296   :  { %v1685_v9 = vadd.f32 %v1684_v6, %v1460_v4  ;;  %v1686_v10 = vpop.f32.mrf.mxu0 }
 0x297   :  { %v1464_v26 = vpop.f32.mrf.mxu1 }
 0x298   :  { %1839 = vst [vmem:[#allocation7 + $0x8] sm:$0xff] %v1685_v9  ;;  %v1465_v56 = vadd.f32 %v3003_v13, %v1464_v26  ;;  %v1689_v11 = vpop.f32.mrf.mxu0 }
 0x299   :  { %v1466_v12 = vpop.f32.mrf.mxu1 }
 0x29a   :  { %v1690_v49 = vadd.f32 %v1689_v11, %v1465_v56  ;;  %v1691_v14 = vpop.f32.mrf.mxu0 }
 0x29b   :  { %v1469_v15 = vpop.f32.mrf.mxu1 }
 0x29c   :  { %1840 = vst [vmem:[#allocation7 + $0x10] sm:$0xff] %v1690_v49  ;;  %v1470_v18 = vadd.f32 %v3003_v13, %v1469_v15  ;;  %v1694_v52 = vpop.f32.mrf.mxu0 }
 0x29d   :  { %v1471_v16 = vpop.f32.mrf.mxu1 }
 0x29e   :  { %v1695_v19 = vadd.f32 %v1694_v52, %v1470_v18  ;;  %v1696_v48 = vpop.f32.mrf.mxu0 }
 0x29f   :  { %v1474_v20 = vpop.f32.mrf.mxu1 }
 0x2a0   :  { %1841 = vst [vmem:[#allocation7 + $0x18] sm:$0xff] %v1695_v19  ;;  %v1475_v21 = vadd.f32 %v3003_v13, %v1474_v20  ;;  %v1699_v54 = vpop.f32.mrf.mxu0 }
 0x2a1   :  { %v1476_v23 = vpop.f32.mrf.mxu1 }
 0x2a2   :  { %v1700_v17 = vadd.f32 %v1699_v54, %v1475_v21  ;;  %v1701_v36 = vpop.f32.mrf.mxu0 }
 0x2a3   :  { %v1479_v24 = vpop.f32.mrf.mxu1 }
 0x2a4   :  { %1842 = vst [vmem:[#allocation7 + $0x20] sm:$0xff] %v1700_v17  ;;  %v1480_v27 = vadd.f32 %v3003_v13, %v1479_v24  ;;  %v1704_v28 = vpop.f32.mrf.mxu0 }
 0x2a5   :  { %v1481_v29 = vpop.f32.mrf.mxu1 }
 0x2a6   :  { %v1705_v60 = vadd.f32 %v1704_v28, %v1480_v27  ;;  %v1706_v51 = vpop.f32.mrf.mxu0 }
 0x2a7   :  { %v1484_v3 = vpop.f32.mrf.mxu1 }
 0x2a8   :  { %1843 = vst [vmem:[#allocation7 + $0x28] sm:$0xff] %v1705_v60  ;;  %v1485_v30 = vadd.f32 %v3003_v13, %v1484_v3  ;;  %v1709_v32 = vpop.f32.mrf.mxu0 }
 0x2a9   :  { %v1486_v7 = vpop.f32.mrf.mxu1 }
 0x2aa   :  { %v1710_v57 = vadd.f32 %v1709_v32, %v1485_v30  ;;  %v1711_v25 = vpop.f32.mrf.mxu0 }
 0x2ab   :  { %v1489_v37 = vpop.f32.mrf.mxu1 }
 0x2ac   :  { %1844 = vst [vmem:[#allocation7 + $0x30] sm:$0xff] %v1710_v57  ;;  %v1490_v39 = vadd.f32 %v3003_v13, %v1489_v37  ;;  %v1714_v41 = vpop.f32.mrf.mxu0 }
 0x2ad   :  { %v1491_v42 = vpop.f32.mrf.mxu1 }
 0x2ae   :  { %v1715_v45 = vadd.f32 %v1714_v41, %v1490_v39  ;;  %v1716_v22 = vpop.f32.mrf.mxu0 }
 0x2af   :  { %v1494_v33 = vpop.f32.mrf.mxu1 }
 0x2b0   :  { %1845 = vst [vmem:[#allocation7 + $0x38] sm:$0xff] %v1715_v45  ;;  %v1495_v38 = vadd.f32 %v3003_v13, %v1494_v33  ;;  %v1719_v44 = vpop.f32.mrf.mxu0 }
 0x2b1   :  { %v1496_v34 = vpop.f32.mrf.mxu1 }
 0x2b2   :  { %v1720_v0 = vadd.f32 %v1719_v44, %v1495_v38  ;;  %v1721_v35 = vpop.f32.mrf.mxu0 }
 0x2b3   :  { %v1499_v47 = vpop.f32.mrf.mxu1 }
 0x2b4   :  { %1846 = vst [vmem:[#allocation7 + $0x40] sm:$0xff] %v1720_v0  ;;  %v1500_v43 = vadd.f32 %v3003_v13, %v1499_v47  ;;  %v1724_v2 = vpop.f32.mrf.mxu0 }
 0x2b5   :  { %v1501_v46 = vpop.f32.mrf.mxu1 }
 0x2b6   :  { %v1725_v50 = vadd.f32 %v1724_v2, %v1500_v43  ;;  %v1726_v53 = vpop.f32.mrf.mxu0 }
 0x2b7   :  { %v1504_v55 = vpop.f32.mrf.mxu1 }
 0x2b8   :  { %1847 = vst [vmem:[#allocation7 + $0x48] sm:$0xff] %v1725_v50  ;;  %v1505_v58 = vadd.f32 %v3003_v13, %v1504_v55  ;;  %v1729_v40 = vpop.f32.mrf.mxu0 }
 0x2b9   :  { %v1506_v59 = vpop.f32.mrf.mxu1 }
 0x2ba   :  { %v1730_v61 = vadd.f32 %v1729_v40, %v1505_v58  ;;  %v1731_v62 = vpop.f32.mrf.mxu0 }
 0x2bb   :  { %v1509_v63 = vpop.f32.mrf.mxu1 }
 0x2bc   :  { %1848 = vst [vmem:[#allocation7 + $0x50] sm:$0xff] %v1730_v61  ;;  %v1510_v1 = vadd.f32 %v3003_v13, %v1509_v63  ;;  %v1734_v5 = vpop.f32.mrf.mxu0 }
 0x2bd   :  { %v1511_v31 = vpop.f32.mrf.mxu1 }
 0x2be   :  { %v1735_v4 = vadd.f32 %v1734_v5, %v1510_v1  ;;  %v1736_v6 = vpop.f32.mrf.mxu0 }
 0x2bf   :  { %v1514_v8 = vpop.f32.mrf.mxu1 }
 0x2c0   :  { %1849 = vst [vmem:[#allocation7 + $0x58] sm:$0xff] %v1735_v4  ;;  %v1515_v9 = vadd.f32 %v3003_v13, %v1514_v8  ;;  %v1739_v10 = vpop.f32.mrf.mxu0 }
 0x2c1   :  { %v1516_v26 = vpop.f32.mrf.mxu1 }
 0x2c2   :  { %v1740_v56 = vadd.f32 %v1739_v10, %v1515_v9  ;;  %v1741_v11 = vpop.f32.mrf.mxu0 }
 0x2c3   :  { %v1519_v12 = vpop.f32.mrf.mxu1 }
 0x2c4   :  { %1850 = vst [vmem:[#allocation7 + $0x60] sm:$0xff] %v1740_v56  ;;  %v1520_v49 = vadd.f32 %v3003_v13, %v1519_v12  ;;  %v1744_v14 = vpop.f32.mrf.mxu0 }
 0x2c5   :  { %v1521_v15 = vpop.f32.mrf.mxu1 }
 0x2c6   :  { %v1745_v18 = vadd.f32 %v1744_v14, %v1520_v49  ;;  %v1746_v52 = vpop.f32.mrf.mxu0 }
 0x2c7   :  { %v1524_v16 = vpop.f32.mrf.mxu1 }
 0x2c8   :  { %1851 = vst [vmem:[#allocation7 + $0x68] sm:$0xff] %v1745_v18  ;;  %v1525_v19 = vadd.f32 %v3003_v13, %v1524_v16  ;;  %v1749_v48 = vpop.f32.mrf.mxu0 }
 0x2c9   :  { %v1526_v20 = vpop.f32.mrf.mxu1 }
 0x2ca   :  { %v1750_v21 = vadd.f32 %v1749_v48, %v1525_v19  ;;  %v1751_v54 = vpop.f32.mrf.mxu0 }
 0x2cb   :  { %v1529_v23 = vpop.f32.mrf.mxu1 }
 0x2cc   :  { %1852 = vst [vmem:[#allocation7 + $0x70] sm:$0xff] %v1750_v21  ;;  %v1530_v17 = vadd.f32 %v3003_v13, %v1529_v23  ;;  %v1754_v36 = vpop.f32.mrf.mxu0 }
 0x2cd   :  { %v1531_v24 = vpop.f32.mrf.mxu1 }
 0x2ce   :  { %v1755_v27 = vadd.f32 %v1754_v36, %v1530_v17  ;;  %v1756_v28 = vpop.f32.mrf.mxu0 }
 0x2cf   :  { %v1534_v29 = vpop.f32.mrf.mxu1 }
 0x2d0   :  { %1853 = vst [vmem:[#allocation7 + $0x78] sm:$0xff] %v1755_v27  ;;  %v1535_v60 = vadd.f32 %v3003_v13, %v1534_v29  ;;  %v1759_v51 = vpop.f32.mrf.mxu0 }
 0x2d1   :  { %v1536_v3 = vpop.f32.mrf.mxu1 }
 0x2d2   :  { %v1760_v30 = vadd.f32 %v1759_v51, %v1535_v60  ;;  %v1761_v32 = vpop.f32.mrf.mxu0 }
 0x2d3   :  { %v1539_v7 = vpop.f32.mrf.mxu1 }
 0x2d4   :  { %1854 = vst [vmem:[#allocation7 + $0x80] sm:$0xff] %v1760_v30  ;;  %v1540_v57 = vadd.f32 %v3003_v13, %v1539_v7  ;;  %v1764_v25 = vpop.f32.mrf.mxu0 }
 0x2d5   :  { %v1541_v37 = vpop.f32.mrf.mxu1 }
 0x2d6   :  { %v1765_v39 = vadd.f32 %v1764_v25, %v1540_v57  ;;  %v1766_v41 = vpop.f32.mrf.mxu0 }
 0x2d7   :  { %v1544_v42 = vpop.f32.mrf.mxu1 }
 0x2d8   :  { %1855 = vst [vmem:[#allocation7 + $0x88] sm:$0xff] %v1765_v39  ;;  %v1545_v45 = vadd.f32 %v3003_v13, %v1544_v42  ;;  %v1769_v22 = vpop.f32.mrf.mxu0 }
 0x2d9   :  { %v1546_v33 = vpop.f32.mrf.mxu1 }
 0x2da   :  { %v1770_v38 = vadd.f32 %v1769_v22, %v1545_v45  ;;  %v1771_v44 = vpop.f32.mrf.mxu0 }
 0x2db   :  { %v1549_v34 = vpop.f32.mrf.mxu1 }
 0x2dc   :  { %1856 = vst [vmem:[#allocation7 + $0x90] sm:$0xff] %v1770_v38  ;;  %v1550_v0 = vadd.f32 %v3003_v13, %v1549_v34  ;;  %v1774_v35 = vpop.f32.mrf.mxu0 }
 0x2dd   :  { %v1551_v47 = vpop.f32.mrf.mxu1 }
 0x2de   :  { %v1775_v43 = vadd.f32 %v1774_v35, %v1550_v0  ;;  %v1776_v2 = vpop.f32.mrf.mxu0 }
 0x2df   :  { %v1554_v46 = vpop.f32.mrf.mxu1 }
 0x2e0   :  { %1857 = vst [vmem:[#allocation7 + $0x98] sm:$0xff] %v1775_v43  ;;  %v1555_v50 = vadd.f32 %v3003_v13, %v1554_v46  ;;  %v1779_v53 = vpop.f32.mrf.mxu0 }
 0x2e1   :  { %v1556_v55 = vpop.f32.mrf.mxu1 }
 0x2e2   :  { %v1780_v58 = vadd.f32 %v1779_v53, %v1555_v50  ;;  %v1781_v40 = vpop.f32.mrf.mxu0 }
 0x2e3   :  { %v1559_v59 = vpop.f32.mrf.mxu1 }
 0x2e4   :  { %1858 = vst [vmem:[#allocation7 + $0xa0] sm:$0xff] %v1780_v58  ;;  %v1560_v61 = vadd.f32 %v3003_v13, %v1559_v59  ;;  %v1784_v62 = vpop.f32.mrf.mxu0 }
 0x2e5   :  { %v1561_v63 = vpop.f32.mrf.mxu1 }
 0x2e6   :  { %v1785_v1 = vadd.f32 %v1784_v62, %v1560_v61  ;;  %v1786_v5 = vpop.f32.mrf.mxu0 }
 0x2e7   :  { %v1564_v31 = vpop.f32.mrf.mxu1 }
 0x2e8   :  { %1859 = vst [vmem:[#allocation7 + $0xa8] sm:$0xff] %v1785_v1  ;;  %v1565_v4 = vadd.f32 %v3003_v13, %v1564_v31  ;;  %v1789_v6 = vpop.f32.mrf.mxu0 }
 0x2e9   :  { %v1566_v8 = vpop.f32.mrf.mxu1 }
 0x2ea   :  { %v1790_v9 = vadd.f32 %v1789_v6, %v1565_v4  ;;  %v1791_v10 = vpop.f32.mrf.mxu0 }
 0x2eb   :  { %v1569_v26 = vpop.f32.mrf.mxu1 }
 0x2ec   :  { %1860 = vst [vmem:[#allocation7 + $0xb0] sm:$0xff] %v1790_v9  ;;  %v1570_v56 = vadd.f32 %v3003_v13, %v1569_v26  ;;  %v1794_v11 = vpop.f32.mrf.mxu0 }
 0x2ed   :  { %v1571_v12 = vpop.f32.mrf.mxu1 }
 0x2ee   :  { %v1795_v49 = vadd.f32 %v1794_v11, %v1570_v56  ;;  %v1796_v14 = vpop.f32.mrf.mxu0 }
 0x2ef   :  { %v1574_v15 = vpop.f32.mrf.mxu1 }
 0x2f0   :  { %1861 = vst [vmem:[#allocation7 + $0xb8] sm:$0xff] %v1795_v49  ;;  %v1575_v18 = vadd.f32 %v3003_v13, %v1574_v15  ;;  %v1799_v52 = vpop.f32.mrf.mxu0 }
 0x2f1   :  { %v1576_v16 = vpop.f32.mrf.mxu1 }
 0x2f2   :  { %v1800_v19 = vadd.f32 %v1799_v52, %v1575_v18  ;;  %v1801_v48 = vpop.f32.mrf.mxu0 }
 0x2f3   :  { %v1579_v20 = vpop.f32.mrf.mxu1 }
 0x2f4   :  { %1862 = vst [vmem:[#allocation7 + $0xc0] sm:$0xff] %v1800_v19  ;;  %v1580_v21 = vadd.f32 %v3003_v13, %v1579_v20  ;;  %v1804_v54 = vpop.f32.mrf.mxu0 }
 0x2f5   :  { %v1581_v23 = vpop.f32.mrf.mxu1 }
 0x2f6   :  { %v1805_v17 = vadd.f32 %v1804_v54, %v1580_v21  ;;  %v1806_v36 = vpop.f32.mrf.mxu0 }
 0x2f7   :  { %v1584_v24 = vpop.f32.mrf.mxu1 }
 0x2f8   :  { %1863 = vst [vmem:[#allocation7 + $0xc8] sm:$0xff] %v1805_v17  ;;  %v1585_v27 = vadd.f32 %v3003_v13, %v1584_v24  ;;  %v1809_v28 = vpop.f32.mrf.mxu0 }
 0x2f9   :  { %v1586_v29 = vpop.f32.mrf.mxu1 }
 0x2fa   :  { %v1810_v60 = vadd.f32 %v1809_v28, %v1585_v27  ;;  %v1811_v51 = vpop.f32.mrf.mxu0 }
 0x2fb   :  { %v1589_v3 = vpop.f32.mrf.mxu1 }
 0x2fc   :  { %1864 = vst [vmem:[#allocation7 + $0xd0] sm:$0xff] %v1810_v60  ;;  %v1590_v30 = vadd.f32 %v3003_v13, %v1589_v3  ;;  %v1814_v32 = vpop.f32.mrf.mxu0 }
 0x2fd   :  { %v1591_v7 = vpop.f32.mrf.mxu1 }
 0x2fe   :  { %v1815_v57 = vadd.f32 %v1814_v32, %v1590_v30  ;;  %v1816_v25 = vpop.f32.mrf.mxu0 }
 0x2ff   :  { %v1594_v37 = vpop.f32.mrf.mxu1 }
 0x300   :  { %1865 = vst [vmem:[#allocation7 + $0xd8] sm:$0xff] %v1815_v57  ;;  %v1595_v39 = vadd.f32 %v3003_v13, %v1594_v37  ;;  %v1819_v41 = vpop.f32.mrf.mxu0 }
 0x301   :  { %v1596_v42 = vpop.f32.mrf.mxu1 }
 0x302   :  { %v1820_v45 = vadd.f32 %v1819_v41, %v1595_v39  ;;  %v1821_v22 = vpop.f32.mrf.mxu0 }
 0x303   :  { %v1599_v33 = vpop.f32.mrf.mxu1 }
 0x304   :  { %1866 = vst [vmem:[#allocation7 + $0xe0] sm:$0xff] %v1820_v45  ;;  %v1600_v38 = vadd.f32 %v3003_v13, %v1599_v33  ;;  %v1824_v44 = vpop.f32.mrf.mxu0 }
 0x305   :  { %v1601_v34 = vpop.f32.mrf.mxu1 }
 0x306   :  { %v1825_v0 = vadd.f32 %v1824_v44, %v1600_v38  ;;  %v1826_v35 = vpop.f32.mrf.mxu0 }
 0x307   :  { %v1604_v47 = vpop.f32.mrf.mxu1 }
 0x308   :  { %1867 = vst [vmem:[#allocation7 + $0xe8] sm:$0xff] %v1825_v0  ;;  %v1605_v43 = vadd.f32 %v3003_v13, %v1604_v47  ;;  %v1829_v2 = vpop.f32.mrf.mxu0 }
 0x309   :  { %v1606_v46 = vpop.f32.mrf.mxu1 }
 0x30a   :  { %v1830_v50 = vadd.f32 %v1829_v2, %v1605_v43  ;;  %v1831_v53 = vpop.f32.mrf.mxu0 }
 0x30b   :  { %v1609_v55 = vpop.f32.mrf.mxu1 }
 0x30c   :  { %1868 = vst [vmem:[#allocation7 + $0xf0] sm:$0xff] %v1830_v50  ;;  %v1610_v58 = vadd.f32 %v3003_v13, %v1609_v55  ;;  %v1834_v40 = vpop.f32.mrf.mxu0 }
 0x30d   :  { %v1611_v59 = vpop.f32.mrf.mxu1 }
 0x30e   :  { %v1835_v61 = vadd.f32 %v1834_v40, %v1610_v58  ;;  %v1836_v62 = vpop.f32.mrf.mxu0 }
 0x310   :  { %1869 = vst [vmem:[#allocation7 + $0xf8] sm:$0xff] %v1835_v61 }
 0x311   :  { %2372 = shalt.err (!%p2369_p0)
}
 0x312   :  { %1881 = dma.vmem_to_hbm [thread:$0]  %s1876_s24, 4096, %s3050_s7, [#allocation4], %s2391_s11, %s2391_s11, %s2392_s12  }
 0x313   :  { %2385 = dma.done.wait [#allocation4], 4096  }
 0x314   :  { %2386 = vsyncadd [#allocation4], 4294963200 }
 0x315   :  { %1885 = vsyncpa [#allocation3], 1 }
 0x316   :  { %1886 = vsyncpa [#allocation6], 1 }
 0x317   :  { %1887 = vsyncpa [#allocation4], 1 }

</bundles_post_ra>
